<compile_context>
chip_gen: v7x
topology: tpu7x:2x2x1
jax: 0.10.0
libtpu: 0.0.40
codegen_flags: <defaults>
</compile_context>

<pallas_src>
import jax
import jax.numpy as jnp
from jax.experimental import pallas as pl
from jax.experimental.pallas import tpu as pltpu


def _dual_gru_imputer_kernel(x_ref, m_ref, wx_ref, wh_ref, b_ref,
                             wo_ref, bo_ref, imp_ref):
    """Both GRU imputation chains (fwd + time-reversed bwd) in one recurrence.

    Layouts (time-major; the two directions are packed along the lane axis):
      x_ref, m_ref : (S, B, 2F)  lanes [0:F)=forward-time slice,
                                 lanes [F:2F)=time-reversed slice (pre-flipped
                                 in the wrapper).
      wx_ref       : (2F, 8H)   input->gates, columns
                                 [r_f|r_b|z_f|z_b|n_in_f|n_in_b|n_hid_f|n_hid_b]
      wh_ref       : (2H, 8H)   hidden->gates, same column layout.
      b_ref        : (1, 8H)    [r(folded)|z(folded)|b_ih_n|b_hh_n] per dir.
      wo_ref       : (2H, 2F)   block-diagonal output projection.
      bo_ref       : (1, 2F)
      imp_ref      : (S, B, 2F) per-step imputation for both directions.
    """
    S, B, F2 = x_ref.shape
    H = b_ref.shape[-1] // 8

    wx = wx_ref[...]                          # (2F, 8H)
    wh = wh_ref[...]                          # (2H, 8H)
    wo = wo_ref[...]                          # (2H, 2F)
    # Hoist bias broadcasts out of the (unrolled) time loop: JAX does not CSE
    # broadcast_in_dim, so a per-step `+ b` would re-emit it every iteration.
    b_full = jnp.broadcast_to(b_ref[...], (B, 8 * H))
    bo_full = jnp.broadcast_to(bo_ref[...], (B, F2))

    def step(s, carry):
        h, xhat = carry                       # (B, 2H), (B, 2F)
        x_t = x_ref[s]                        # (B, 2F)  dense slab load
        m_t = m_ref[s]
        # Feed observed values; where missing, feed the previous prediction.
        x_in = xhat + m_t * (x_t - xhat)
        # Two MXU dots shared by both directions (no per-step lane concat).
        g = (jnp.dot(x_in, wx, preferred_element_type=jnp.float32)
             + jnp.dot(h, wh, preferred_element_type=jnp.float32)
             + b_full)                        # (B, 8H)
        # PyTorch GRUCell semantics, both directions side by side (2H lanes).
        r = jax.nn.sigmoid(g[:, 0:2 * H])
        z = jax.nn.sigmoid(g[:, 2 * H:4 * H])
        n = jnp.tanh(g[:, 4 * H:6 * H] + r * g[:, 6 * H:8 * H])
        h_new = n + z * (h - n)               # (B, 2H)
        x_hat = jnp.dot(h_new, wo, preferred_element_type=jnp.float32) + bo_full
        imp_ref[s] = x_hat                    # time-outermost, no reshape
        return h_new, x_hat

    h0 = jnp.zeros((B, 2 * H), jnp.float32)
    xhat0 = jnp.zeros((B, F2), jnp.float32)
    # Full unroll for short sequences; partial unroll keeps LLO visibility
    # without blowing up code size / vreg pressure for long ones.
    unroll = S if S <= 32 else 8
    jax.lax.fori_loop(0, S, step, (h0, xhat0), unroll=unroll)


def _packed_forward(x_cat, m_cat, packed):
    """One pallas_call; the fused dual-direction recurrence runs inside."""
    S, B, F2 = x_cat.shape
    H8 = packed["b"].shape[-1]
    H2 = packed["w_h"].shape[0]

    grid_spec = pltpu.PrefetchScalarGridSpec(
        num_scalar_prefetch=0,
        grid=(1,),
        in_specs=[
            pl.BlockSpec((S, B, F2), lambda i: (0, 0, 0)),   # x   (time-major)
            pl.BlockSpec((S, B, F2), lambda i: (0, 0, 0)),   # mask
            pl.BlockSpec((F2, H8), lambda i: (0, 0)),        # W_x
            pl.BlockSpec((H2, H8), lambda i: (0, 0)),        # W_h
            pl.BlockSpec((1, H8), lambda i: (0, 0)),         # b
            pl.BlockSpec((H2, F2), lambda i: (0, 0)),        # W_o
            pl.BlockSpec((1, F2), lambda i: (0, 0)),         # b_o
        ],
        out_specs=pl.BlockSpec((S, B, F2), lambda i: (0, 0, 0)),
    )

    return pl.pallas_call(
        _dual_gru_imputer_kernel,
        out_shape=jax.ShapeDtypeStruct((S, B, F2), jnp.float32),
        grid_spec=grid_spec,
        compiler_params=pltpu.CompilerParams(
            dimension_semantics=("arbitrary",)),
    )(x_cat, m_cat, packed["w_x"], packed["w_h"], packed["b"],
      packed["w_o"], packed["b_o"])


def init_params(key, input_size, n_nodes, hidden_size):
    """Deterministic init (uniform(-1/sqrt(H), 1/sqrt(H)), as torch GRUCell)."""
    F = n_nodes * input_size
    H = hidden_size
    scale = 1.0 / jnp.sqrt(jnp.float32(H))

    def unif(k, shape):
        return jax.random.uniform(k, shape, jnp.float32, -scale, scale)

    params = {}
    for name in ("fwd", "bwd"):
        key, *ks = jax.random.split(key, 7)
        params[name] = {
            "w_ih": unif(ks[0], (F, 3 * H)),     # columns: [r | z | n]
            "w_hh": unif(ks[1], (H, 3 * H)),
            "b_ih": unif(ks[2], (1, 3 * H)),
            "b_hh": unif(ks[3], (1, 3 * H)),
            "w_out": unif(ks[4], (H, F)),
            "b_out": unif(ks[5], (1, F)),
        }
    return params


def pack_params(params, input_size, n_nodes, hidden_size):
    """Pre-pack both directions' weights for the fused dual-chain kernel.

    Gate-column layout (width H each): [r_f|r_b|z_f|z_b|n_in_f|n_in_b|n_hid_f|n_hid_b].
    Zero blocks keep the n-gate input/hidden terms separable, preserving exact
    PyTorch GRUCell semantics; r/z biases are folded, n biases kept separate.
    """
    F = n_nodes * input_size
    H = hidden_size
    pf, pb = params["fwd"], params["bwd"]

    def gate(w, g):
        return w[:, g * H:(g + 1) * H]

    def bgate(b, g):
        return b[0, g * H:(g + 1) * H]

    zF = jnp.zeros((F, H), jnp.float32)
    zH = jnp.zeros((H, H), jnp.float32)

    # W_x (2F, 8H): rows [0:F) act on the forward-time input, [F:2F) on the
    # time-reversed input.
    wx_top = jnp.concatenate([gate(pf["w_ih"], 0), zF,
                              gate(pf["w_ih"], 1), zF,
                              gate(pf["w_ih"], 2), zF,
                              zF, zF], axis=1)
    wx_bot = jnp.concatenate([zF, gate(pb["w_ih"], 0),
                              zF, gate(pb["w_ih"], 1),
                              zF, gate(pb["w_ih"], 2),
                              zF, zF], axis=1)
    w_x = jnp.concatenate([wx_top, wx_bot], axis=0)            # (2F, 8H)

    # W_h (2H, 8H): rows [0:H) act on h_fwd, [H:2H) on h_bwd.
    wh_top = jnp.concatenate([gate(pf["w_hh"], 0), zH,
                              gate(pf["w_hh"], 1), zH,
                              zH, zH,
                              gate(pf["w_hh"], 2), zH], axis=1)
    wh_bot = jnp.concatenate([zH, gate(pb["w_hh"], 0),
                              zH, gate(pb["w_hh"], 1),
                              zH, zH,
                              zH, gate(pb["w_hh"], 2)], axis=1)
    w_h = jnp.concatenate([wh_top, wh_bot], axis=0)            # (2H, 8H)

    b = jnp.concatenate([
        bgate(pf["b_ih"], 0) + bgate(pf["b_hh"], 0),
        bgate(pb["b_ih"], 0) + bgate(pb["b_hh"], 0),
        bgate(pf["b_ih"], 1) + bgate(pf["b_hh"], 1),
        bgate(pb["b_ih"], 1) + bgate(pb["b_hh"], 1),
        bgate(pf["b_ih"], 2), bgate(pb["b_ih"], 2),
        bgate(pf["b_hh"], 2), bgate(pb["b_hh"], 2),
    ])[None, :]                                                # (1, 8H)

    # Block-diagonal output projection (2H, 2F) and concatenated bias (1, 2F).
    w_o = jnp.block([[pf["w_out"], jnp.zeros((H, F), jnp.float32)],
                     [jnp.zeros((H, F), jnp.float32), pb["w_out"]]])
    b_o = jnp.concatenate([pf["b_out"], pb["b_out"]], axis=1)

    return {"w_x": w_x.astype(jnp.float32), "w_h": w_h.astype(jnp.float32),
            "b": b.astype(jnp.float32), "w_o": w_o.astype(jnp.float32),
            "b_o": b_o.astype(jnp.float32)}


@jax.jit
def bigan_forward(x, mask, packed_params):
    """BiGAN.forward == Generator(x, mask).

    x, mask: (B, S, N, C).  Returns (imputed_x, (imp_fwd, imp_bwd)),
    all shaped (B, S, N, C).
    """
    B, S, N, C = x.shape
    F = N * C
    x_bsf = x.reshape(B, S, F).astype(jnp.float32)
    m_bsf = mask.reshape(B, S, F).astype(jnp.float32)

    # Time-major; the backward-direction copy is pre-reversed in time so the
    # kernel walks a single monotonic step index for both chains.
    x_sbf = jnp.transpose(x_bsf, (1, 0, 2))                    # (S, B, F)
    m_sbf = jnp.transpose(m_bsf, (1, 0, 2))
    x_cat = jnp.concatenate([x_sbf, x_sbf[::-1]], axis=-1)     # (S, B, 2F)
    m_cat = jnp.concatenate([m_sbf, m_sbf[::-1]], axis=-1)

    imp = _packed_forward(x_cat, m_cat, packed_params)         # (S, B, 2F)
    imp_fwd = jnp.transpose(imp[:, :, :F], (1, 0, 2))          # (B, S, F)
    imp_bwd = jnp.transpose(imp[::-1, :, F:], (1, 0, 2))       # un-reverse time

    imputation = 0.5 * (imp_fwd + imp_bwd)
    out = imputation + m_bsf * (x_bsf - imputation)            # m*x + (1-m)*imp

    def to_bsnc(a):
        return a.reshape(B, S, N, C)

    return to_bsnc(out), (to_bsnc(imp_fwd), to_bsnc(imp_bwd))


def _reference_forward(x, mask, params):
    """Pure-JAX reference (validates the fused/packed kernel numerics)."""
    B, S, N, C = x.shape
    F = N * C
    H = params["fwd"]["w_hh"].shape[0]
    hp = jax.lax.Precision.HIGHEST
    x_bsf = x.reshape(B, S, F).astype(jnp.float32)
    m_bsf = mask.reshape(B, S, F).astype(jnp.float32)

    def run_dir(p, xs, ms):
        def step(carry, inp):
            h, xhat = carry
            x_t, m_t = inp
            x_in = m_t * x_t + (1.0 - m_t) * xhat
            gi = jnp.dot(x_in, p["w_ih"], precision=hp) + p["b_ih"]
            gh = jnp.dot(h, p["w_hh"], precision=hp) + p["b_hh"]
            r = jax.nn.sigmoid(gi[:, :H] + gh[:, :H])
            z = jax.nn.sigmoid(gi[:, H:2 * H] + gh[:, H:2 * H])
            n = jnp.tanh(gi[:, 2 * H:] + r * gh[:, 2 * H:])
            h_new = (1.0 - z) * n + z * h
            x_hat = jnp.dot(h_new, p["w_out"], precision=hp) + p["b_out"]
            return (h_new, x_hat), x_hat
        init = (jnp.zeros((B, H), jnp.float32), jnp.zeros((B, F), jnp.float32))
        _, out = jax.lax.scan(step, init, (xs, ms))
        return out                                             # (S, B, F)

    xs = jnp.transpose(x_bsf, (1, 0, 2))
    ms = jnp.transpose(m_bsf, (1, 0, 2))
    imp_f = run_dir(params["fwd"], xs, ms)
    imp_b = run_dir(params["bwd"], xs[::-1], ms[::-1])[::-1]
    imp_fwd = jnp.transpose(imp_f, (1, 0, 2))
    imp_bwd = jnp.transpose(imp_b, (1, 0, 2))
    imputation = 0.5 * (imp_fwd + imp_bwd)
    out = m_bsf * x_bsf + (1.0 - m_bsf) * imputation

    def to_bsnc(a):
        return a.reshape(B, S, N, C)

    return to_bsnc(out), to_bsnc(imp_fwd), to_bsnc(imp_bwd)


if __name__ == "__main__":
    # Small shapes consistent with the module:
    #   input_size (channels) = 4, n_nodes = 4, hidden_size = 32
    #   batch = 2, seq = 8
    B, S, N, C = 2, 8, 4, 4
    hidden_size = 32

    key = jax.random.PRNGKey(0)
    kx, km, kp = jax.random.split(key, 3)
    x = jax.random.normal(kx, (B, S, N, C), jnp.float32)
    mask = (jax.random.uniform(km, (B, S, N, C)) > 0.3).astype(jnp.float32)

    raw_params = init_params(kp, input_size=C, n_nodes=N,
                             hidden_size=hidden_size)
    packed = pack_params(raw_params, input_size=C, n_nodes=N,
                         hidden_size=hidden_size)

    out, (imp_fwd, imp_bwd) = bigan_forward(x, mask, packed)
    jax.block_until_ready(out)
    jax.block_until_ready(imp_fwd)
    jax.block_until_ready(imp_bwd)

    assert out.shape == (B, S, N, C)
    assert imp_fwd.shape == (B, S, N, C)
    assert imp_bwd.shape == (B, S, N, C)
    assert bool(jnp.all(jnp.isfinite(out)))
    assert bool(jnp.all(jnp.isfinite(imp_fwd)))
    assert bool(jnp.all(jnp.isfinite(imp_bwd)))
    # Observed entries of the blended output must equal the input.
    assert bool(jnp.all(jnp.where(mask > 0, jnp.abs(out - x) < 1e-5, True)))
    # Pure-JAX reference check (validates the fused weight packing).
    ref_out, ref_f, ref_b = _reference_forward(x, mask, raw_params)
    assert bool(jnp.allclose(out, ref_out, atol=2e-3, rtol=2e-3))
    assert bool(jnp.allclose(imp_fwd, ref_f, atol=2e-3, rtol=2e-3))
    assert bool(jnp.allclose(imp_bwd, ref_b, atol=2e-3, rtol=2e-3))
    print("KERNEL_OK")
</pallas_src>

<mosaic_0001>
module attributes {stable_mosaic.version = 11 : i64} {
  func.func @_dual_gru_imputer_kernel(%arg0: i32, %arg1: memref<8x2x32xf32, #tpu.memory_space<vmem>>, %arg2: memref<8x2x32xf32, #tpu.memory_space<vmem>>, %arg3: memref<32x256xf32, #tpu.memory_space<vmem>>, %arg4: memref<64x256xf32, #tpu.memory_space<vmem>>, %arg5: memref<1x256xf32, #tpu.memory_space<vmem>>, %arg6: memref<64x32xf32, #tpu.memory_space<vmem>>, %arg7: memref<1x32xf32, #tpu.memory_space<vmem>>, %arg8: memref<8x2x32xf32, #tpu.memory_space<vmem>>) attributes {dimension_semantics = [#tpu.dimension_semantics<arbitrary>], iteration_bounds = array<i64: 1>, scalar_prefetch = 0 : i64, scratch_operands = 0 : i64, tpu.core_type = #tpu.core_type<tc>, window_params = [{pipeline_mode = #tpu.pipeline_mode<synchronous>, transform_indices = @transform_0, window_bounds = array<i64: 8, 2, 32>}, {pipeline_mode = #tpu.pipeline_mode<synchronous>, transform_indices = @transform_1, window_bounds = array<i64: 8, 2, 32>}, {pipeline_mode = #tpu.pipeline_mode<synchronous>, transform_indices = @transform_2, window_bounds = array<i64: 32, 256>}, {pipeline_mode = #tpu.pipeline_mode<synchronous>, transform_indices = @transform_3, window_bounds = array<i64: 64, 256>}, {pipeline_mode = #tpu.pipeline_mode<synchronous>, transform_indices = @transform_4, window_bounds = array<i64: 1, 256>}, {pipeline_mode = #tpu.pipeline_mode<synchronous>, transform_indices = @transform_5, window_bounds = array<i64: 64, 32>}, {pipeline_mode = #tpu.pipeline_mode<synchronous>, transform_indices = @transform_6, window_bounds = array<i64: 1, 32>}, {pipeline_mode = #tpu.pipeline_mode<synchronous>, transform_indices = @transform_7, window_bounds = array<i64: 8, 2, 32>}]} {
    %c0 = arith.constant 0 : index
    %c0_0 = arith.constant 0 : index
    %0 = vector.load %arg3[%c0, %c0_0] : memref<32x256xf32, #tpu.memory_space<vmem>>, vector<32x256xf32>
    %c0_1 = arith.constant 0 : index
    %c0_2 = arith.constant 0 : index
    %1 = vector.load %arg4[%c0_1, %c0_2] : memref<64x256xf32, #tpu.memory_space<vmem>>, vector<64x256xf32>
    %c0_3 = arith.constant 0 : index
    %c0_4 = arith.constant 0 : index
    %2 = vector.load %arg6[%c0_3, %c0_4] : memref<64x32xf32, #tpu.memory_space<vmem>>, vector<64x32xf32>
    %c0_5 = arith.constant 0 : index
    %c0_6 = arith.constant 0 : index
    %3 = vector.load %arg5[%c0_5, %c0_6] : memref<1x256xf32, #tpu.memory_space<vmem>>, vector<1x256xf32>
    %4 = vector.shape_cast %3 : vector<1x256xf32> to vector<1x256xf32>
    %5 = vector.broadcast %4 : vector<1x256xf32> to vector<2x256xf32>
    %c0_7 = arith.constant 0 : index
    %c0_8 = arith.constant 0 : index
    %6 = vector.load %arg7[%c0_7, %c0_8] : memref<1x32xf32, #tpu.memory_space<vmem>>, vector<1x32xf32>
    %7 = vector.shape_cast %6 : vector<1x32xf32> to vector<1x32xf32>
    %8 = vector.broadcast %7 : vector<1x32xf32> to vector<2x32xf32>
    %cst = arith.constant 0.000000e+00 : f32
    %9 = vector.broadcast %cst : f32 to vector<2x64xf32>
    %cst_9 = arith.constant 0.000000e+00 : f32
    %10 = vector.broadcast %cst_9 : f32 to vector<2x32xf32>
    %c0_i32 = arith.constant 0 : i32
    %11 = arith.index_cast %c0_i32 : i32 to index
    %c0_10 = arith.constant 0 : index
    %c0_11 = arith.constant 0 : index
    %12 = vector.load %arg1[%11, %c0_10, %c0_11] : memref<8x2x32xf32, #tpu.memory_space<vmem>>, vector<1x2x32xf32>
    %13 = vector.shape_cast %12 : vector<1x2x32xf32> to vector<2x32xf32>
    %14 = arith.index_cast %c0_i32 : i32 to index
    %c0_12 = arith.constant 0 : index
    %c0_13 = arith.constant 0 : index
    %15 = vector.load %arg2[%14, %c0_12, %c0_13] : memref<8x2x32xf32, #tpu.memory_space<vmem>>, vector<1x2x32xf32>
    %16 = vector.shape_cast %15 : vector<1x2x32xf32> to vector<2x32xf32>
    %17 = arith.subf %13, %10 : vector<2x32xf32>
    %18 = arith.mulf %16, %17 : vector<2x32xf32>
    %19 = arith.addf %10, %18 : vector<2x32xf32>
    %cst_14 = arith.constant dense<0.000000e+00> : vector<2x256xf32>
    %20 = tpu.matmul %19, %0, %cst_14 {dimension_numbers = #tpu.dot_dimension_numbers<[1], [0], [0], [1], [0, 0, 1, 1], [], []>} : vector<2x32xf32>, vector<32x256xf32>, vector<2x256xf32> -> vector<2x256xf32>
    %cst_15 = arith.constant dense<0.000000e+00> : vector<2x256xf32>
    %21 = tpu.matmul %9, %1, %cst_15 {dimension_numbers = #tpu.dot_dimension_numbers<[1], [0], [0], [1], [0, 0, 1, 1], [], []>} : vector<2x64xf32>, vector<64x256xf32>, vector<2x256xf32> -> vector<2x256xf32>
    %22 = arith.addf %20, %21 : vector<2x256xf32>
    %23 = arith.addf %22, %5 : vector<2x256xf32>
    %24 = vector.extract_strided_slice %23 {offsets = [0, 0], sizes = [2, 64], strides = [1, 1]} : vector<2x256xf32> to vector<2x64xf32>
    %25 = arith.negf %24 : vector<2x64xf32>
    %26 = math.exp %25 : vector<2x64xf32>
    %cst_16 = arith.constant 1.000000e+00 : f32
    %27 = vector.broadcast %cst_16 : f32 to vector<2x64xf32>
    %28 = arith.addf %27, %26 : vector<2x64xf32>
    %29 = arith.divf %27, %28 : vector<2x64xf32>
    %30 = vector.extract_strided_slice %23 {offsets = [0, 64], sizes = [2, 64], strides = [1, 1]} : vector<2x256xf32> to vector<2x64xf32>
    %31 = arith.negf %30 : vector<2x64xf32>
    %32 = math.exp %31 : vector<2x64xf32>
    %cst_17 = arith.constant 1.000000e+00 : f32
    %33 = vector.broadcast %cst_17 : f32 to vector<2x64xf32>
    %34 = arith.addf %33, %32 : vector<2x64xf32>
    %35 = arith.divf %33, %34 : vector<2x64xf32>
    %36 = vector.extract_strided_slice %23 {offsets = [0, 128], sizes = [2, 64], strides = [1, 1]} : vector<2x256xf32> to vector<2x64xf32>
    %37 = vector.extract_strided_slice %23 {offsets = [0, 192], sizes = [2, 64], strides = [1, 1]} : vector<2x256xf32> to vector<2x64xf32>
    %38 = arith.mulf %29, %37 : vector<2x64xf32>
    %39 = arith.addf %36, %38 : vector<2x64xf32>
    %40 = math.tanh %39 : vector<2x64xf32>
    %41 = arith.subf %9, %40 : vector<2x64xf32>
    %42 = arith.mulf %35, %41 : vector<2x64xf32>
    %43 = arith.addf %40, %42 : vector<2x64xf32>
    %cst_18 = arith.constant dense<0.000000e+00> : vector<2x32xf32>
    %44 = tpu.matmul %43, %2, %cst_18 {dimension_numbers = #tpu.dot_dimension_numbers<[1], [0], [0], [1], [0, 0, 1, 1], [], []>} : vector<2x64xf32>, vector<64x32xf32>, vector<2x32xf32> -> vector<2x32xf32>
    %45 = arith.addf %44, %8 : vector<2x32xf32>
    %46 = arith.index_cast %c0_i32 : i32 to index
    %c0_19 = arith.constant 0 : index
    %c0_20 = arith.constant 0 : index
    %47 = vector.load %arg8[%46, %c0_19, %c0_20] : memref<8x2x32xf32, #tpu.memory_space<vmem>>, vector<1x2x32xf32>
    %48 = vector.shape_cast %47 : vector<1x2x32xf32> to vector<2x32xf32>
    %49 = vector.shape_cast %45 : vector<2x32xf32> to vector<1x2x32xf32>
    tpu.vector_store %arg8[%46, %c0_19, %c0_20], %49 {strides = array<i32>} : memref<8x2x32xf32, #tpu.memory_space<vmem>>, vector<1x2x32xf32>,
    %c1_i32 = arith.constant 1 : i32
    %50 = arith.index_cast %c1_i32 : i32 to index
    %c0_21 = arith.constant 0 : index
    %c0_22 = arith.constant 0 : index
    %51 = vector.load %arg1[%50, %c0_21, %c0_22] : memref<8x2x32xf32, #tpu.memory_space<vmem>>, vector<1x2x32xf32>
    %52 = vector.shape_cast %51 : vector<1x2x32xf32> to vector<2x32xf32>
    %53 = arith.index_cast %c1_i32 : i32 to index
    %c0_23 = arith.constant 0 : index
    %c0_24 = arith.constant 0 : index
    %54 = vector.load %arg2[%53, %c0_23, %c0_24] : memref<8x2x32xf32, #tpu.memory_space<vmem>>, vector<1x2x32xf32>
    %55 = vector.shape_cast %54 : vector<1x2x32xf32> to vector<2x32xf32>
    %56 = arith.subf %52, %45 : vector<2x32xf32>
    %57 = arith.mulf %55, %56 : vector<2x32xf32>
    %58 = arith.addf %45, %57 : vector<2x32xf32>
    %cst_25 = arith.constant dense<0.000000e+00> : vector<2x256xf32>
    %59 = tpu.matmul %58, %0, %cst_25 {dimension_numbers = #tpu.dot_dimension_numbers<[1], [0], [0], [1], [0, 0, 1, 1], [], []>} : vector<2x32xf32>, vector<32x256xf32>, vector<2x256xf32> -> vector<2x256xf32>
    %cst_26 = arith.constant dense<0.000000e+00> : vector<2x256xf32>
    %60 = tpu.matmul %43, %1, %cst_26 {dimension_numbers = #tpu.dot_dimension_numbers<[1], [0], [0], [1], [0, 0, 1, 1], [], []>} : vector<2x64xf32>, vector<64x256xf32>, vector<2x256xf32> -> vector<2x256xf32>
    %61 = arith.addf %59, %60 : vector<2x256xf32>
    %62 = arith.addf %61, %5 : vector<2x256xf32>
    %63 = vector.extract_strided_slice %62 {offsets = [0, 0], sizes = [2, 64], strides = [1, 1]} : vector<2x256xf32> to vector<2x64xf32>
    %64 = arith.negf %63 : vector<2x64xf32>
    %65 = math.exp %64 : vector<2x64xf32>
    %cst_27 = arith.constant 1.000000e+00 : f32
    %66 = vector.broadcast %cst_27 : f32 to vector<2x64xf32>
    %67 = arith.addf %66, %65 : vector<2x64xf32>
    %68 = arith.divf %66, %67 : vector<2x64xf32>
    %69 = vector.extract_strided_slice %62 {offsets = [0, 64], sizes = [2, 64], strides = [1, 1]} : vector<2x256xf32> to vector<2x64xf32>
    %70 = arith.negf %69 : vector<2x64xf32>
    %71 = math.exp %70 : vector<2x64xf32>
    %cst_28 = arith.constant 1.000000e+00 : f32
    %72 = vector.broadcast %cst_28 : f32 to vector<2x64xf32>
    %73 = arith.addf %72, %71 : vector<2x64xf32>
    %74 = arith.divf %72, %73 : vector<2x64xf32>
    %75 = vector.extract_strided_slice %62 {offsets = [0, 128], sizes = [2, 64], strides = [1, 1]} : vector<2x256xf32> to vector<2x64xf32>
    %76 = vector.extract_strided_slice %62 {offsets = [0, 192], sizes = [2, 64], strides = [1, 1]} : vector<2x256xf32> to vector<2x64xf32>
    %77 = arith.mulf %68, %76 : vector<2x64xf32>
    %78 = arith.addf %75, %77 : vector<2x64xf32>
    %79 = math.tanh %78 : vector<2x64xf32>
    %80 = arith.subf %43, %79 : vector<2x64xf32>
    %81 = arith.mulf %74, %80 : vector<2x64xf32>
    %82 = arith.addf %79, %81 : vector<2x64xf32>
    %cst_29 = arith.constant dense<0.000000e+00> : vector<2x32xf32>
    %83 = tpu.matmul %82, %2, %cst_29 {dimension_numbers = #tpu.dot_dimension_numbers<[1], [0], [0], [1], [0, 0, 1, 1], [], []>} : vector<2x64xf32>, vector<64x32xf32>, vector<2x32xf32> -> vector<2x32xf32>
    %84 = arith.addf %83, %8 : vector<2x32xf32>
    %85 = arith.index_cast %c1_i32 : i32 to index
    %c0_30 = arith.constant 0 : index
    %c0_31 = arith.constant 0 : index
    %86 = vector.load %arg8[%85, %c0_30, %c0_31] : memref<8x2x32xf32, #tpu.memory_space<vmem>>, vector<1x2x32xf32>
    %87 = vector.shape_cast %86 : vector<1x2x32xf32> to vector<2x32xf32>
    %88 = vector.shape_cast %84 : vector<2x32xf32> to vector<1x2x32xf32>
    tpu.vector_store %arg8[%85, %c0_30, %c0_31], %88 {strides = array<i32>} : memref<8x2x32xf32, #tpu.memory_space<vmem>>, vector<1x2x32xf32>,
    %c2_i32 = arith.constant 2 : i32
    %89 = arith.index_cast %c2_i32 : i32 to index
    %c0_32 = arith.constant 0 : index
    %c0_33 = arith.constant 0 : index
    %90 = vector.load %arg1[%89, %c0_32, %c0_33] : memref<8x2x32xf32, #tpu.memory_space<vmem>>, vector<1x2x32xf32>
    %91 = vector.shape_cast %90 : vector<1x2x32xf32> to vector<2x32xf32>
    %92 = arith.index_cast %c2_i32 : i32 to index
    %c0_34 = arith.constant 0 : index
    %c0_35 = arith.constant 0 : index
    %93 = vector.load %arg2[%92, %c0_34, %c0_35] : memref<8x2x32xf32, #tpu.memory_space<vmem>>, vector<1x2x32xf32>
    %94 = vector.shape_cast %93 : vector<1x2x32xf32> to vector<2x32xf32>
    %95 = arith.subf %91, %84 : vector<2x32xf32>
    %96 = arith.mulf %94, %95 : vector<2x32xf32>
    %97 = arith.addf %84, %96 : vector<2x32xf32>
    %cst_36 = arith.constant dense<0.000000e+00> : vector<2x256xf32>
    %98 = tpu.matmul %97, %0, %cst_36 {dimension_numbers = #tpu.dot_dimension_numbers<[1], [0], [0], [1], [0, 0, 1, 1], [], []>} : vector<2x32xf32>, vector<32x256xf32>, vector<2x256xf32> -> vector<2x256xf32>
    %cst_37 = arith.constant dense<0.000000e+00> : vector<2x256xf32>
    %99 = tpu.matmul %82, %1, %cst_37 {dimension_numbers = #tpu.dot_dimension_numbers<[1], [0], [0], [1], [0, 0, 1, 1], [], []>} : vector<2x64xf32>, vector<64x256xf32>, vector<2x256xf32> -> vector<2x256xf32>
    %100 = arith.addf %98, %99 : vector<2x256xf32>
    %101 = arith.addf %100, %5 : vector<2x256xf32>
    %102 = vector.extract_strided_slice %101 {offsets = [0, 0], sizes = [2, 64], strides = [1, 1]} : vector<2x256xf32> to vector<2x64xf32>
    %103 = arith.negf %102 : vector<2x64xf32>
    %104 = math.exp %103 : vector<2x64xf32>
    %cst_38 = arith.constant 1.000000e+00 : f32
    %105 = vector.broadcast %cst_38 : f32 to vector<2x64xf32>
    %106 = arith.addf %105, %104 : vector<2x64xf32>
    %107 = arith.divf %105, %106 : vector<2x64xf32>
    %108 = vector.extract_strided_slice %101 {offsets = [0, 64], sizes = [2, 64], strides = [1, 1]} : vector<2x256xf32> to vector<2x64xf32>
    %109 = arith.negf %108 : vector<2x64xf32>
    %110 = math.exp %109 : vector<2x64xf32>
    %cst_39 = arith.constant 1.000000e+00 : f32
    %111 = vector.broadcast %cst_39 : f32 to vector<2x64xf32>
    %112 = arith.addf %111, %110 : vector<2x64xf32>
    %113 = arith.divf %111, %112 : vector<2x64xf32>
    %114 = vector.extract_strided_slice %101 {offsets = [0, 128], sizes = [2, 64], strides = [1, 1]} : vector<2x256xf32> to vector<2x64xf32>
    %115 = vector.extract_strided_slice %101 {offsets = [0, 192], sizes = [2, 64], strides = [1, 1]} : vector<2x256xf32> to vector<2x64xf32>
    %116 = arith.mulf %107, %115 : vector<2x64xf32>
    %117 = arith.addf %114, %116 : vector<2x64xf32>
    %118 = math.tanh %117 : vector<2x64xf32>
    %119 = arith.subf %82, %118 : vector<2x64xf32>
    %120 = arith.mulf %113, %119 : vector<2x64xf32>
    %121 = arith.addf %118, %120 : vector<2x64xf32>
    %cst_40 = arith.constant dense<0.000000e+00> : vector<2x32xf32>
    %122 = tpu.matmul %121, %2, %cst_40 {dimension_numbers = #tpu.dot_dimension_numbers<[1], [0], [0], [1], [0, 0, 1, 1], [], []>} : vector<2x64xf32>, vector<64x32xf32>, vector<2x32xf32> -> vector<2x32xf32>
    %123 = arith.addf %122, %8 : vector<2x32xf32>
    %124 = arith.index_cast %c2_i32 : i32 to index
    %c0_41 = arith.constant 0 : index
    %c0_42 = arith.constant 0 : index
    %125 = vector.load %arg8[%124, %c0_41, %c0_42] : memref<8x2x32xf32, #tpu.memory_space<vmem>>, vector<1x2x32xf32>
    %126 = vector.shape_cast %125 : vector<1x2x32xf32> to vector<2x32xf32>
    %127 = vector.shape_cast %123 : vector<2x32xf32> to vector<1x2x32xf32>
    tpu.vector_store %arg8[%124, %c0_41, %c0_42], %127 {strides = array<i32>} : memref<8x2x32xf32, #tpu.memory_space<vmem>>, vector<1x2x32xf32>,
    %c3_i32 = arith.constant 3 : i32
    %128 = arith.index_cast %c3_i32 : i32 to index
    %c0_43 = arith.constant 0 : index
    %c0_44 = arith.constant 0 : index
    %129 = vector.load %arg1[%128, %c0_43, %c0_44] : memref<8x2x32xf32, #tpu.memory_space<vmem>>, vector<1x2x32xf32>
    %130 = vector.shape_cast %129 : vector<1x2x32xf32> to vector<2x32xf32>
    %131 = arith.index_cast %c3_i32 : i32 to index
    %c0_45 = arith.constant 0 : index
    %c0_46 = arith.constant 0 : index
    %132 = vector.load %arg2[%131, %c0_45, %c0_46] : memref<8x2x32xf32, #tpu.memory_space<vmem>>, vector<1x2x32xf32>
    %133 = vector.shape_cast %132 : vector<1x2x32xf32> to vector<2x32xf32>
    %134 = arith.subf %130, %123 : vector<2x32xf32>
    %135 = arith.mulf %133, %134 : vector<2x32xf32>
    %136 = arith.addf %123, %135 : vector<2x32xf32>
    %cst_47 = arith.constant dense<0.000000e+00> : vector<2x256xf32>
    %137 = tpu.matmul %136, %0, %cst_47 {dimension_numbers = #tpu.dot_dimension_numbers<[1], [0], [0], [1], [0, 0, 1, 1], [], []>} : vector<2x32xf32>, vector<32x256xf32>, vector<2x256xf32> -> vector<2x256xf32>
    %cst_48 = arith.constant dense<0.000000e+00> : vector<2x256xf32>
    %138 = tpu.matmul %121, %1, %cst_48 {dimension_numbers = #tpu.dot_dimension_numbers<[1], [0], [0], [1], [0, 0, 1, 1], [], []>} : vector<2x64xf32>, vector<64x256xf32>, vector<2x256xf32> -> vector<2x256xf32>
    %139 = arith.addf %137, %138 : vector<2x256xf32>
    %140 = arith.addf %139, %5 : vector<2x256xf32>
    %141 = vector.extract_strided_slice %140 {offsets = [0, 0], sizes = [2, 64], strides = [1, 1]} : vector<2x256xf32> to vector<2x64xf32>
    %142 = arith.negf %141 : vector<2x64xf32>
    %143 = math.exp %142 : vector<2x64xf32>
    %cst_49 = arith.constant 1.000000e+00 : f32
    %144 = vector.broadcast %cst_49 : f32 to vector<2x64xf32>
    %145 = arith.addf %144, %143 : vector<2x64xf32>
    %146 = arith.divf %144, %145 : vector<2x64xf32>
    %147 = vector.extract_strided_slice %140 {offsets = [0, 64], sizes = [2, 64], strides = [1, 1]} : vector<2x256xf32> to vector<2x64xf32>
    %148 = arith.negf %147 : vector<2x64xf32>
    %149 = math.exp %148 : vector<2x64xf32>
    %cst_50 = arith.constant 1.000000e+00 : f32
    %150 = vector.broadcast %cst_50 : f32 to vector<2x64xf32>
    %151 = arith.addf %150, %149 : vector<2x64xf32>
    %152 = arith.divf %150, %151 : vector<2x64xf32>
    %153 = vector.extract_strided_slice %140 {offsets = [0, 128], sizes = [2, 64], strides = [1, 1]} : vector<2x256xf32> to vector<2x64xf32>
    %154 = vector.extract_strided_slice %140 {offsets = [0, 192], sizes = [2, 64], strides = [1, 1]} : vector<2x256xf32> to vector<2x64xf32>
    %155 = arith.mulf %146, %154 : vector<2x64xf32>
    %156 = arith.addf %153, %155 : vector<2x64xf32>
    %157 = math.tanh %156 : vector<2x64xf32>
    %158 = arith.subf %121, %157 : vector<2x64xf32>
    %159 = arith.mulf %152, %158 : vector<2x64xf32>
    %160 = arith.addf %157, %159 : vector<2x64xf32>
    %cst_51 = arith.constant dense<0.000000e+00> : vector<2x32xf32>
    %161 = tpu.matmul %160, %2, %cst_51 {dimension_numbers = #tpu.dot_dimension_numbers<[1], [0], [0], [1], [0, 0, 1, 1], [], []>} : vector<2x64xf32>, vector<64x32xf32>, vector<2x32xf32> -> vector<2x32xf32>
    %162 = arith.addf %161, %8 : vector<2x32xf32>
    %163 = arith.index_cast %c3_i32 : i32 to index
    %c0_52 = arith.constant 0 : index
    %c0_53 = arith.constant 0 : index
    %164 = vector.load %arg8[%163, %c0_52, %c0_53] : memref<8x2x32xf32, #tpu.memory_space<vmem>>, vector<1x2x32xf32>
    %165 = vector.shape_cast %164 : vector<1x2x32xf32> to vector<2x32xf32>
    %166 = vector.shape_cast %162 : vector<2x32xf32> to vector<1x2x32xf32>
    tpu.vector_store %arg8[%163, %c0_52, %c0_53], %166 {strides = array<i32>} : memref<8x2x32xf32, #tpu.memory_space<vmem>>, vector<1x2x32xf32>,
    %c4_i32 = arith.constant 4 : i32
    %167 = arith.index_cast %c4_i32 : i32 to index
    %c0_54 = arith.constant 0 : index
    %c0_55 = arith.constant 0 : index
    %168 = vector.load %arg1[%167, %c0_54, %c0_55] : memref<8x2x32xf32, #tpu.memory_space<vmem>>, vector<1x2x32xf32>
    %169 = vector.shape_cast %168 : vector<1x2x32xf32> to vector<2x32xf32>
    %170 = arith.index_cast %c4_i32 : i32 to index
    %c0_56 = arith.constant 0 : index
    %c0_57 = arith.constant 0 : index
    %171 = vector.load %arg2[%170, %c0_56, %c0_57] : memref<8x2x32xf32, #tpu.memory_space<vmem>>, vector<1x2x32xf32>
    %172 = vector.shape_cast %171 : vector<1x2x32xf32> to vector<2x32xf32>
    %173 = arith.subf %169, %162 : vector<2x32xf32>
    %174 = arith.mulf %172, %173 : vector<2x32xf32>
    %175 = arith.addf %162, %174 : vector<2x32xf32>
    %cst_58 = arith.constant dense<0.000000e+00> : vector<2x256xf32>
    %176 = tpu.matmul %175, %0, %cst_58 {dimension_numbers = #tpu.dot_dimension_numbers<[1], [0], [0], [1], [0, 0, 1, 1], [], []>} : vector<2x32xf32>, vector<32x256xf32>, vector<2x256xf32> -> vector<2x256xf32>
    %cst_59 = arith.constant dense<0.000000e+00> : vector<2x256xf32>
    %177 = tpu.matmul %160, %1, %cst_59 {dimension_numbers = #tpu.dot_dimension_numbers<[1], [0], [0], [1], [0, 0, 1, 1], [], []>} : vector<2x64xf32>, vector<64x256xf32>, vector<2x256xf32> -> vector<2x256xf32>
    %178 = arith.addf %176, %177 : vector<2x256xf32>
    %179 = arith.addf %178, %5 : vector<2x256xf32>
    %180 = vector.extract_strided_slice %179 {offsets = [0, 0], sizes = [2, 64], strides = [1, 1]} : vector<2x256xf32> to vector<2x64xf32>
    %181 = arith.negf %180 : vector<2x64xf32>
    %182 = math.exp %181 : vector<2x64xf32>
    %cst_60 = arith.constant 1.000000e+00 : f32
    %183 = vector.broadcast %cst_60 : f32 to vector<2x64xf32>
    %184 = arith.addf %183, %182 : vector<2x64xf32>
    %185 = arith.divf %183, %184 : vector<2x64xf32>
    %186 = vector.extract_strided_slice %179 {offsets = [0, 64], sizes = [2, 64], strides = [1, 1]} : vector<2x256xf32> to vector<2x64xf32>
    %187 = arith.negf %186 : vector<2x64xf32>
    %188 = math.exp %187 : vector<2x64xf32>
    %cst_61 = arith.constant 1.000000e+00 : f32
    %189 = vector.broadcast %cst_61 : f32 to vector<2x64xf32>
    %190 = arith.addf %189, %188 : vector<2x64xf32>
    %191 = arith.divf %189, %190 : vector<2x64xf32>
    %192 = vector.extract_strided_slice %179 {offsets = [0, 128], sizes = [2, 64], strides = [1, 1]} : vector<2x256xf32> to vector<2x64xf32>
    %193 = vector.extract_strided_slice %179 {offsets = [0, 192], sizes = [2, 64], strides = [1, 1]} : vector<2x256xf32> to vector<2x64xf32>
    %194 = arith.mulf %185, %193 : vector<2x64xf32>
    %195 = arith.addf %192, %194 : vector<2x64xf32>
    %196 = math.tanh %195 : vector<2x64xf32>
    %197 = arith.subf %160, %196 : vector<2x64xf32>
    %198 = arith.mulf %191, %197 : vector<2x64xf32>
    %199 = arith.addf %196, %198 : vector<2x64xf32>
    %cst_62 = arith.constant dense<0.000000e+00> : vector<2x32xf32>
    %200 = tpu.matmul %199, %2, %cst_62 {dimension_numbers = #tpu.dot_dimension_numbers<[1], [0], [0], [1], [0, 0, 1, 1], [], []>} : vector<2x64xf32>, vector<64x32xf32>, vector<2x32xf32> -> vector<2x32xf32>
    %201 = arith.addf %200, %8 : vector<2x32xf32>
    %202 = arith.index_cast %c4_i32 : i32 to index
    %c0_63 = arith.constant 0 : index
    %c0_64 = arith.constant 0 : index
    %203 = vector.load %arg8[%202, %c0_63, %c0_64] : memref<8x2x32xf32, #tpu.memory_space<vmem>>, vector<1x2x32xf32>
    %204 = vector.shape_cast %203 : vector<1x2x32xf32> to vector<2x32xf32>
    %205 = vector.shape_cast %201 : vector<2x32xf32> to vector<1x2x32xf32>
    tpu.vector_store %arg8[%202, %c0_63, %c0_64], %205 {strides = array<i32>} : memref<8x2x32xf32, #tpu.memory_space<vmem>>, vector<1x2x32xf32>,
    %c5_i32 = arith.constant 5 : i32
    %206 = arith.index_cast %c5_i32 : i32 to index
    %c0_65 = arith.constant 0 : index
    %c0_66 = arith.constant 0 : index
    %207 = vector.load %arg1[%206, %c0_65, %c0_66] : memref<8x2x32xf32, #tpu.memory_space<vmem>>, vector<1x2x32xf32>
    %208 = vector.shape_cast %207 : vector<1x2x32xf32> to vector<2x32xf32>
    %209 = arith.index_cast %c5_i32 : i32 to index
    %c0_67 = arith.constant 0 : index
    %c0_68 = arith.constant 0 : index
    %210 = vector.load %arg2[%209, %c0_67, %c0_68] : memref<8x2x32xf32, #tpu.memory_space<vmem>>, vector<1x2x32xf32>
    %211 = vector.shape_cast %210 : vector<1x2x32xf32> to vector<2x32xf32>
    %212 = arith.subf %208, %201 : vector<2x32xf32>
    %213 = arith.mulf %211, %212 : vector<2x32xf32>
    %214 = arith.addf %201, %213 : vector<2x32xf32>
    %cst_69 = arith.constant dense<0.000000e+00> : vector<2x256xf32>
    %215 = tpu.matmul %214, %0, %cst_69 {dimension_numbers = #tpu.dot_dimension_numbers<[1], [0], [0], [1], [0, 0, 1, 1], [], []>} : vector<2x32xf32>, vector<32x256xf32>, vector<2x256xf32> -> vector<2x256xf32>
    %cst_70 = arith.constant dense<0.000000e+00> : vector<2x256xf32>
    %216 = tpu.matmul %199, %1, %cst_70 {dimension_numbers = #tpu.dot_dimension_numbers<[1], [0], [0], [1], [0, 0, 1, 1], [], []>} : vector<2x64xf32>, vector<64x256xf32>, vector<2x256xf32> -> vector<2x256xf32>
    %217 = arith.addf %215, %216 : vector<2x256xf32>
    %218 = arith.addf %217, %5 : vector<2x256xf32>
    %219 = vector.extract_strided_slice %218 {offsets = [0, 0], sizes = [2, 64], strides = [1, 1]} : vector<2x256xf32> to vector<2x64xf32>
    %220 = arith.negf %219 : vector<2x64xf32>
    %221 = math.exp %220 : vector<2x64xf32>
    %cst_71 = arith.constant 1.000000e+00 : f32
    %222 = vector.broadcast %cst_71 : f32 to vector<2x64xf32>
    %223 = arith.addf %222, %221 : vector<2x64xf32>
    %224 = arith.divf %222, %223 : vector<2x64xf32>
    %225 = vector.extract_strided_slice %218 {offsets = [0, 64], sizes = [2, 64], strides = [1, 1]} : vector<2x256xf32> to vector<2x64xf32>
    %226 = arith.negf %225 : vector<2x64xf32>
    %227 = math.exp %226 : vector<2x64xf32>
    %cst_72 = arith.constant 1.000000e+00 : f32
    %228 = vector.broadcast %cst_72 : f32 to vector<2x64xf32>
    %229 = arith.addf %228, %227 : vector<2x64xf32>
    %230 = arith.divf %228, %229 : vector<2x64xf32>
    %231 = vector.extract_strided_slice %218 {offsets = [0, 128], sizes = [2, 64], strides = [1, 1]} : vector<2x256xf32> to vector<2x64xf32>
    %232 = vector.extract_strided_slice %218 {offsets = [0, 192], sizes = [2, 64], strides = [1, 1]} : vector<2x256xf32> to vector<2x64xf32>
    %233 = arith.mulf %224, %232 : vector<2x64xf32>
    %234 = arith.addf %231, %233 : vector<2x64xf32>
    %235 = math.tanh %234 : vector<2x64xf32>
    %236 = arith.subf %199, %235 : vector<2x64xf32>
    %237 = arith.mulf %230, %236 : vector<2x64xf32>
    %238 = arith.addf %235, %237 : vector<2x64xf32>
    %cst_73 = arith.constant dense<0.000000e+00> : vector<2x32xf32>
    %239 = tpu.matmul %238, %2, %cst_73 {dimension_numbers = #tpu.dot_dimension_numbers<[1], [0], [0], [1], [0, 0, 1, 1], [], []>} : vector<2x64xf32>, vector<64x32xf32>, vector<2x32xf32> -> vector<2x32xf32>
    %240 = arith.addf %239, %8 : vector<2x32xf32>
    %241 = arith.index_cast %c5_i32 : i32 to index
    %c0_74 = arith.constant 0 : index
    %c0_75 = arith.constant 0 : index
    %242 = vector.load %arg8[%241, %c0_74, %c0_75] : memref<8x2x32xf32, #tpu.memory_space<vmem>>, vector<1x2x32xf32>
    %243 = vector.shape_cast %242 : vector<1x2x32xf32> to vector<2x32xf32>
    %244 = vector.shape_cast %240 : vector<2x32xf32> to vector<1x2x32xf32>
    tpu.vector_store %arg8[%241, %c0_74, %c0_75], %244 {strides = array<i32>} : memref<8x2x32xf32, #tpu.memory_space<vmem>>, vector<1x2x32xf32>,
    %c6_i32 = arith.constant 6 : i32
    %245 = arith.index_cast %c6_i32 : i32 to index
    %c0_76 = arith.constant 0 : index
    %c0_77 = arith.constant 0 : index
    %246 = vector.load %arg1[%245, %c0_76, %c0_77] : memref<8x2x32xf32, #tpu.memory_space<vmem>>, vector<1x2x32xf32>
    %247 = vector.shape_cast %246 : vector<1x2x32xf32> to vector<2x32xf32>
    %248 = arith.index_cast %c6_i32 : i32 to index
    %c0_78 = arith.constant 0 : index
    %c0_79 = arith.constant 0 : index
    %249 = vector.load %arg2[%248, %c0_78, %c0_79] : memref<8x2x32xf32, #tpu.memory_space<vmem>>, vector<1x2x32xf32>
    %250 = vector.shape_cast %249 : vector<1x2x32xf32> to vector<2x32xf32>
    %251 = arith.subf %247, %240 : vector<2x32xf32>
    %252 = arith.mulf %250, %251 : vector<2x32xf32>
    %253 = arith.addf %240, %252 : vector<2x32xf32>
    %cst_80 = arith.constant dense<0.000000e+00> : vector<2x256xf32>
    %254 = tpu.matmul %253, %0, %cst_80 {dimension_numbers = #tpu.dot_dimension_numbers<[1], [0], [0], [1], [0, 0, 1, 1], [], []>} : vector<2x32xf32>, vector<32x256xf32>, vector<2x256xf32> -> vector<2x256xf32>
    %cst_81 = arith.constant dense<0.000000e+00> : vector<2x256xf32>
    %255 = tpu.matmul %238, %1, %cst_81 {dimension_numbers = #tpu.dot_dimension_numbers<[1], [0], [0], [1], [0, 0, 1, 1], [], []>} : vector<2x64xf32>, vector<64x256xf32>, vector<2x256xf32> -> vector<2x256xf32>
    %256 = arith.addf %254, %255 : vector<2x256xf32>
    %257 = arith.addf %256, %5 : vector<2x256xf32>
    %258 = vector.extract_strided_slice %257 {offsets = [0, 0], sizes = [2, 64], strides = [1, 1]} : vector<2x256xf32> to vector<2x64xf32>
    %259 = arith.negf %258 : vector<2x64xf32>
    %260 = math.exp %259 : vector<2x64xf32>
    %cst_82 = arith.constant 1.000000e+00 : f32
    %261 = vector.broadcast %cst_82 : f32 to vector<2x64xf32>
    %262 = arith.addf %261, %260 : vector<2x64xf32>
    %263 = arith.divf %261, %262 : vector<2x64xf32>
    %264 = vector.extract_strided_slice %257 {offsets = [0, 64], sizes = [2, 64], strides = [1, 1]} : vector<2x256xf32> to vector<2x64xf32>
    %265 = arith.negf %264 : vector<2x64xf32>
    %266 = math.exp %265 : vector<2x64xf32>
    %cst_83 = arith.constant 1.000000e+00 : f32
    %267 = vector.broadcast %cst_83 : f32 to vector<2x64xf32>
    %268 = arith.addf %267, %266 : vector<2x64xf32>
    %269 = arith.divf %267, %268 : vector<2x64xf32>
    %270 = vector.extract_strided_slice %257 {offsets = [0, 128], sizes = [2, 64], strides = [1, 1]} : vector<2x256xf32> to vector<2x64xf32>
    %271 = vector.extract_strided_slice %257 {offsets = [0, 192], sizes = [2, 64], strides = [1, 1]} : vector<2x256xf32> to vector<2x64xf32>
    %272 = arith.mulf %263, %271 : vector<2x64xf32>
    %273 = arith.addf %270, %272 : vector<2x64xf32>
    %274 = math.tanh %273 : vector<2x64xf32>
    %275 = arith.subf %238, %274 : vector<2x64xf32>
    %276 = arith.mulf %269, %275 : vector<2x64xf32>
    %277 = arith.addf %274, %276 : vector<2x64xf32>
    %cst_84 = arith.constant dense<0.000000e+00> : vector<2x32xf32>
    %278 = tpu.matmul %277, %2, %cst_84 {dimension_numbers = #tpu.dot_dimension_numbers<[1], [0], [0], [1], [0, 0, 1, 1], [], []>} : vector<2x64xf32>, vector<64x32xf32>, vector<2x32xf32> -> vector<2x32xf32>
    %279 = arith.addf %278, %8 : vector<2x32xf32>
    %280 = arith.index_cast %c6_i32 : i32 to index
    %c0_85 = arith.constant 0 : index
    %c0_86 = arith.constant 0 : index
    %281 = vector.load %arg8[%280, %c0_85, %c0_86] : memref<8x2x32xf32, #tpu.memory_space<vmem>>, vector<1x2x32xf32>
    %282 = vector.shape_cast %281 : vector<1x2x32xf32> to vector<2x32xf32>
    %283 = vector.shape_cast %279 : vector<2x32xf32> to vector<1x2x32xf32>
    tpu.vector_store %arg8[%280, %c0_85, %c0_86], %283 {strides = array<i32>} : memref<8x2x32xf32, #tpu.memory_space<vmem>>, vector<1x2x32xf32>,
    %c7_i32 = arith.constant 7 : i32
    %284 = arith.index_cast %c7_i32 : i32 to index
    %c0_87 = arith.constant 0 : index
    %c0_88 = arith.constant 0 : index
    %285 = vector.load %arg1[%284, %c0_87, %c0_88] : memref<8x2x32xf32, #tpu.memory_space<vmem>>, vector<1x2x32xf32>
    %286 = vector.shape_cast %285 : vector<1x2x32xf32> to vector<2x32xf32>
    %287 = arith.index_cast %c7_i32 : i32 to index
    %c0_89 = arith.constant 0 : index
    %c0_90 = arith.constant 0 : index
    %288 = vector.load %arg2[%287, %c0_89, %c0_90] : memref<8x2x32xf32, #tpu.memory_space<vmem>>, vector<1x2x32xf32>
    %289 = vector.shape_cast %288 : vector<1x2x32xf32> to vector<2x32xf32>
    %290 = arith.subf %286, %279 : vector<2x32xf32>
    %291 = arith.mulf %289, %290 : vector<2x32xf32>
    %292 = arith.addf %279, %291 : vector<2x32xf32>
    %cst_91 = arith.constant dense<0.000000e+00> : vector<2x256xf32>
    %293 = tpu.matmul %292, %0, %cst_91 {dimension_numbers = #tpu.dot_dimension_numbers<[1], [0], [0], [1], [0, 0, 1, 1], [], []>} : vector<2x32xf32>, vector<32x256xf32>, vector<2x256xf32> -> vector<2x256xf32>
    %cst_92 = arith.constant dense<0.000000e+00> : vector<2x256xf32>
    %294 = tpu.matmul %277, %1, %cst_92 {dimension_numbers = #tpu.dot_dimension_numbers<[1], [0], [0], [1], [0, 0, 1, 1], [], []>} : vector<2x64xf32>, vector<64x256xf32>, vector<2x256xf32> -> vector<2x256xf32>
    %295 = arith.addf %293, %294 : vector<2x256xf32>
    %296 = arith.addf %295, %5 : vector<2x256xf32>
    %297 = vector.extract_strided_slice %296 {offsets = [0, 0], sizes = [2, 64], strides = [1, 1]} : vector<2x256xf32> to vector<2x64xf32>
    %298 = arith.negf %297 : vector<2x64xf32>
    %299 = math.exp %298 : vector<2x64xf32>
    %cst_93 = arith.constant 1.000000e+00 : f32
    %300 = vector.broadcast %cst_93 : f32 to vector<2x64xf32>
    %301 = arith.addf %300, %299 : vector<2x64xf32>
    %302 = arith.divf %300, %301 : vector<2x64xf32>
    %303 = vector.extract_strided_slice %296 {offsets = [0, 64], sizes = [2, 64], strides = [1, 1]} : vector<2x256xf32> to vector<2x64xf32>
    %304 = arith.negf %303 : vector<2x64xf32>
    %305 = math.exp %304 : vector<2x64xf32>
    %cst_94 = arith.constant 1.000000e+00 : f32
    %306 = vector.broadcast %cst_94 : f32 to vector<2x64xf32>
    %307 = arith.addf %306, %305 : vector<2x64xf32>
    %308 = arith.divf %306, %307 : vector<2x64xf32>
    %309 = vector.extract_strided_slice %296 {offsets = [0, 128], sizes = [2, 64], strides = [1, 1]} : vector<2x256xf32> to vector<2x64xf32>
    %310 = vector.extract_strided_slice %296 {offsets = [0, 192], sizes = [2, 64], strides = [1, 1]} : vector<2x256xf32> to vector<2x64xf32>
    %311 = arith.mulf %302, %310 : vector<2x64xf32>
    %312 = arith.addf %309, %311 : vector<2x64xf32>
    %313 = math.tanh %312 : vector<2x64xf32>
    %314 = arith.subf %277, %313 : vector<2x64xf32>
    %315 = arith.mulf %308, %314 : vector<2x64xf32>
    %316 = arith.addf %313, %315 : vector<2x64xf32>
    %cst_95 = arith.constant dense<0.000000e+00> : vector<2x32xf32>
    %317 = tpu.matmul %316, %2, %cst_95 {dimension_numbers = #tpu.dot_dimension_numbers<[1], [0], [0], [1], [0, 0, 1, 1], [], []>} : vector<2x64xf32>, vector<64x32xf32>, vector<2x32xf32> -> vector<2x32xf32>
    %318 = arith.addf %317, %8 : vector<2x32xf32>
    %319 = arith.index_cast %c7_i32 : i32 to index
    %c0_96 = arith.constant 0 : index
    %c0_97 = arith.constant 0 : index
    %320 = vector.load %arg8[%319, %c0_96, %c0_97] : memref<8x2x32xf32, #tpu.memory_space<vmem>>, vector<1x2x32xf32>
    %321 = vector.shape_cast %320 : vector<1x2x32xf32> to vector<2x32xf32>
    %322 = vector.shape_cast %318 : vector<2x32xf32> to vector<1x2x32xf32>
    tpu.vector_store %arg8[%319, %c0_96, %c0_97], %322 {strides = array<i32>} : memref<8x2x32xf32, #tpu.memory_space<vmem>>, vector<1x2x32xf32>,
    %c8_i32 = arith.constant 8 : i32
    return
  }
  func.func @transform_0(%arg0: i32) -> (i32, i32, i32) {
    %c0_i32 = arith.constant 0 : i32
    %c0_i32_0 = arith.constant 0 : i32
    %c0_i32_1 = arith.constant 0 : i32
    %c0_i32_2 = arith.constant 0 : i32
    return %c0_i32, %c0_i32_0, %c0_i32_1 : i32, i32, i32
  }
  func.func @transform_1(%arg0: i32) -> (i32, i32, i32) {
    %c0_i32 = arith.constant 0 : i32
    %c0_i32_0 = arith.constant 0 : i32
    %c0_i32_1 = arith.constant 0 : i32
    %c0_i32_2 = arith.constant 0 : i32
    return %c0_i32, %c0_i32_0, %c0_i32_1 : i32, i32, i32
  }
  func.func @transform_2(%arg0: i32) -> (i32, i32) {
    %c0_i32 = arith.constant 0 : i32
    %c0_i32_0 = arith.constant 0 : i32
    %c0_i32_1 = arith.constant 0 : i32
    return %c0_i32, %c0_i32_0 : i32, i32
  }
  func.func @transform_3(%arg0: i32) -> (i32, i32) {
    %c0_i32 = arith.constant 0 : i32
    %c0_i32_0 = arith.constant 0 : i32
    %c0_i32_1 = arith.constant 0 : i32
    return %c0_i32, %c0_i32_0 : i32, i32
  }
  func.func @transform_4(%arg0: i32) -> (i32, i32) {
    %c0_i32 = arith.constant 0 : i32
    %c0_i32_0 = arith.constant 0 : i32
    %c0_i32_1 = arith.constant 0 : i32
    return %c0_i32, %c0_i32_0 : i32, i32
  }
  func.func @transform_5(%arg0: i32) -> (i32, i32) {
    %c0_i32 = arith.constant 0 : i32
    %c0_i32_0 = arith.constant 0 : i32
    %c0_i32_1 = arith.constant 0 : i32
    return %c0_i32, %c0_i32_0 : i32, i32
  }
  func.func @transform_6(%arg0: i32) -> (i32, i32) {
    %c0_i32 = arith.constant 0 : i32
    %c0_i32_0 = arith.constant 0 : i32
    %c0_i32_1 = arith.constant 0 : i32
    return %c0_i32, %c0_i32_0 : i32, i32
  }
  func.func @transform_7(%arg0: i32) -> (i32, i32, i32) {
    %c0_i32 = arith.constant 0 : i32
    %c0_i32_0 = arith.constant 0 : i32
    %c0_i32_1 = arith.constant 0 : i32
    %c0_i32_2 = arith.constant 0 : i32
    return %c0_i32, %c0_i32_0, %c0_i32_1 : i32, i32, i32
  }
}

</mosaic_0001>

<bundles_post_ra>
// kernel: bigan_forward.1
= control target key start
LH: loop header
LB: loop body
LE: loop exit
PB: predicated region body
PF: predicated region fallthrough
CT: control target
= control target key end

     0   :  { %v2740_v3 = vmov 0.0   ;;  %vm156_vm0 = vcmask 261120   ;;  %v60_v40 = vlaneseq  ;;  %s2741_s30 = smov 64   ;;  %v2742_v58 = vmov 0.0|0.0   ;;  %s3268_s3 = inlined_call_operand.vmem [shape: f32[64,256], index: 3, kind: input, shape index: {}]   ;;  %s3269_s2 = inlined_call_operand.vmem [shape: f32[32,256], index: 2, kind: input, shape index: {}]   ;;  %s3270_s0 = inlined_call_operand.vmem [shape: f32[8,2,32], index: 0, kind: input, shape index: {}]   ;;  %s3271_s1 = inlined_call_operand.vmem [shape: f32[8,2,32], index: 1, kind: input, shape index: {}]   ;;  %s3272_s4 = inlined_call_operand.vmem [shape: f32[1,256], index: 4, kind: input, shape index: {}]   ;;  %s3273_s5 = inlined_call_operand.vmem [shape: f32[64,32], index: 5, kind: input, shape index: {}]   ;;  %s3274_s6 = inlined_call_operand.vmem [shape: f32[1,32], index: 6, kind: input, shape index: {}]   ;;  %s3275_s7 = inlined_call_operand.vmem [shape: f32[8,2,32], index: 7, kind: output, shape index: {}]  }
   0x1   :  { %v35_v0 = vld [vmem:[%s3268_s3 + $0x8] sm:$0xff]  ;;  %v37_v1 = vld [vmem:[%s3268_s3 + $0x18] sm:$0xff]  ;;  %v34_v2 = vld [vmem:[%s3268_s3] sm:$0xff]  ;;  %149 = vmatprep.mubr.f32.mxu0 %v2740_v3  ;;  %2408 = vmatprep.subr.bf16.mxu1 %v2742_v58  ;;  %vm2743_vm1 = vmmov 0   ;;  %vm81_vm2 = vcmask 523264   ;;  %vm330_vm3 = vcmask 254976  }
   0x2   :  { %v2794_v4 = vpack.c.bf16 %v37_v1, %v35_v0  ;;  %v36_v5 = vld [vmem:[%s3268_s3 + $0x10] sm:$0xff]  ;;  %v39_v6 = vld [vmem:[%s3268_s3 + $0x28] sm:$0xff]  ;;  %v41_v7 = vld [vmem:[%s3268_s3 + $0x38] sm:$0xff]  ;;  %v61_v41 = vshrl.u32 %v60_v40, 7  ;;  %2248 = vmatprep.mubr.msk.f32.mxu1 %vm2743_vm1, %v2740_v3 }
   0x3   :  { %v2805_v8 = vpack.c.bf16 %v36_v5, %v34_v2  ;;  %v2807_v9 = vpack.c.bf16 %v41_v7, %v39_v6  ;;  %v38_v10 = vld [vmem:[%s3268_s3 + $0x20] sm:$0xff]  ;;  %v40_v11 = vld [vmem:[%s3268_s3 + $0x30] sm:$0xff]  ;;  %v43_v12 = vld [vmem:[%s3268_s3 + $0x48] sm:$0xff] }
   0x4   :  { %2385 = vmatprep.subr.bf16.mxu0 %v2794_v4  ;;  %v45_v13 = vld [vmem:[%s3268_s3 + $0x58] sm:$0xff]  ;;  %v2823_v14 = vpack.c.bf16 %v40_v11, %v38_v10  ;;  %v42_v16 = vld [vmem:[%s3268_s3 + $0x40] sm:$0xff]  ;;  %v44_v17 = vld [vmem:[%s3268_s3 + $0x50] sm:$0xff]  ;;  %v66_v42 = vsub.s32 1, %v61_v41  ;;  %v62_v48 = vsub.s32 0, %v61_v41 }
   0x5   :  { %2387 = vmatpush1.bf16.msra.mxu0 %v2805_v8  ;;  %v2826_v15 = vpack.c.bf16 %v45_v13, %v43_v12  ;;  %v47_v18 = vld [vmem:[%s3268_s3 + $0x68] sm:$0xff]  ;;  %v49_v19 = vld [vmem:[%s3268_s3 + $0x78] sm:$0xff]  ;;  %v2841_v20 = vpack.c.bf16 %v44_v17, %v42_v16  ;;  %v46_v22 = vld [vmem:[%s3268_s3 + $0x60] sm:$0xff] }
   0x6   :  { %2389 = vmatprep.subr.bf16.mxu0 %v2807_v9  ;;  %v2844_v21 = vpack.c.bf16 %v49_v19, %v47_v18  ;;  %v48_v23 = vld [vmem:[%s3268_s3 + $0x70] sm:$0xff]  ;;  %v27_v24 = vld [vmem:[%s3269_s2 + $0x8] sm:$0xff]  ;;  %v29_v25 = vld [vmem:[%s3269_s2 + $0x18] sm:$0xff] }
   0x7   :  { %v2859_v26 = vpack.c.bf16 %v48_v23, %v46_v22  ;;  %v2862_v27 = vpack.c.bf16 %v29_v25, %v27_v24  ;;  %v26_v28 = vld [vmem:[%s3269_s2] sm:$0xff]  ;;  %v28_v29 = vld [vmem:[%s3269_s2 + $0x10] sm:$0xff]  ;;  %v31_v30 = vld [vmem:[%s3269_s2 + $0x28] sm:$0xff] }
   0x8   :  { %v33_v31 = vld [vmem:[%s3269_s2 + $0x38] sm:$0xff]  ;;  %v2877_v32 = vpack.c.bf16 %v28_v29, %v26_v28  ;;  %v30_v34 = vld [vmem:[%s3269_s2 + $0x20] sm:$0xff]  ;;  %v32_v35 = vld [vmem:[%s3269_s2 + $0x30] sm:$0xff] }
   0x9   :  { %2391 = vmatpush1.bf16.msra.mxu0 %v2823_v14  ;;  %v2880_v33 = vpack.c.bf16 %v33_v31, %v31_v30  ;;  %v2890_v36 = vpack.c.bf16 %v32_v35, %v30_v34  ;;  %v77_v37 = vld [vmem:[%s3270_s0] sm:$0x3]  ;;  %v51_v60 = vld [vmem:[%s3273_s5 + $0x8] sm:$0xff]  ;;  %v52_v61 = vld [vmem:[%s3273_s5 + $0x10] sm:$0xff] }
   0xa   :  { %2393 = vmatprep.subr.bf16.mxu0 %v2826_v15  ;;  %v78_v38 = vld [vmem:[%s3271_s1] sm:$0x3]  ;;  %v53_v63 = vld [vmem:[%s3273_s5 + $0x18] sm:$0xff]  ;;  %v55_v2 = vld [vmem:[%s3273_s5 + $0x28] sm:$0xff] }
   0xb   :  { %v79_v39 = vmul.f32 %v78_v38, %v77_v37  ;;  %v58_v43 = vld [vmem:[%s3272_s4] sm:$0x3]  ;;  %v2929_v0 = vpack.c.bf16 %v53_v63, %v52_v61  ;;  %v56_v10 = vld [vmem:[%s3273_s5 + $0x30] sm:$0xff]  ;;  %v57_v11 = vld [vmem:[%s3273_s5 + $0x38] sm:$0xff] }
   0xc   :  { %v2905_v44 = vrot.slane %v58_v43, %v66_v42  ;;  %v2909_v49 = vrot.slane %v58_v43, %v62_v48  ;;  %v50_v59 = vld [vmem:[%s3273_s5] sm:$0xff]  ;;  %v2954_v12 = vpack.c.bf16 %v57_v11, %v56_v10 }
   0xd   :  { %2395 = vmatpush1.bf16.msra.mxu0 %v2841_v20  ;;  %v2923_v62 = vpack.c.bf16 %v51_v60, %v50_v59  ;;  %v54_v1 = vld [vmem:[%s3273_s5 + $0x20] sm:$0xff] }
   0xe   :  { %2397 = vmatprep.subr.bf16.mxu0 %v2844_v21  ;;  %v2941_v6 = vpack.c.bf16 %v55_v2, %v54_v1  ;;  %v2987_v19 = vld [vmem:[%s3274_s6] ss:$0 sm:$0xff]  ;;  %v2111_v23 = vld [vmem:[%s3270_s0 + $0x2] sm:$0x3]  ;;  %v2119_v59 = vld [vmem:[%s3271_s1 + $0x4] sm:$0x3] }
   0xf   :  { %2410 = vmatpush3.bf16.msra.mxu1 %v2923_v62  ;;  %v2112_v28 = vld [vmem:[%s3271_s1 + $0x2] sm:$0x3] }
  0x10   :  { %2411 = vmatprep.subr.bf16.mxu1 %v2742_v58 }
  0x11   :  { %2399 = vmatpush1.bf16.msra.mxu0 %v2859_v26 }
  0x12   :  { %2401 = vmatprep.subr.bf16.mxu0 %v2862_v27 }
  0x13   :  { %2413 = vmatpush3.bf16.msra.mxu1 %v2929_v0 }
  0x14   :  { %150 = vmatmul.mubr.f32.vlgmr.msra.gmra.mrb[0].mxu0 %v2740_v3  ;;  %2414 = vmatprep.subr.bf16.mxu1 %v2742_v58 }
  0x15   :  { %2403 = vmatpush1.bf16.msra.mxu0 %v2877_v32  ;;  %224 = vmatprep.mubr.f32.mxu0 %v2740_v3 }
  0x16   :  { %2405 = vmatprep.subr.bf16.mxu0 %v2880_v33 }
  0x17   :  { %2416 = vmatpush3.bf16.msra.mxu1 %v2941_v6 }
  0x18   :  { %2417 = vmatprep.subr.bf16.mxu1 %v2742_v58 }
  0x19   :  { %2407 = vmatpush1.bf16.msra.mxu0 %v2890_v36 }
  0x1a   :  { %2444 = vmatprep.subr.bf16.mxu0 %v2742_v58 }
  0x1b   :  { %2419 = vmatpush3.bf16.msra.mxu1 %v2954_v12 }
  0x1c   :  { %2108 = vmatmul.mubr.msk.f32.vlgmr.msra.gmra.mrb[0].mxu0 %vm156_vm0, %v79_v39  ;;  %2421 = vmatprep.subr.bf16.mxu1 %v2794_v4 }
  0x1d   :  { %2446 = vmatpush3.bf16.msra.mxu0 %v2923_v62  ;;  %2267 = vmatprep.mubr.msk.f32.mxu0 %vm2743_vm1, %v2740_v3 }
  0x1e   :  { %2447 = vmatprep.subr.bf16.mxu0 %v2742_v58 }
  0x21   :  { %2449 = vmatpush3.bf16.msra.mxu0 %v2929_v0 }
  0x22   :  { %2450 = vmatprep.subr.bf16.mxu0 %v2742_v58 }
  0x25   :  { %2452 = vmatpush3.bf16.msra.mxu0 %v2941_v6 }
  0x26   :  { %2453 = vmatprep.subr.bf16.mxu0 %v2742_v58 }
  0x29   :  { %2455 = vmatpush3.bf16.msra.mxu0 %v2954_v12 }
  0x2a   :  { %2457 = vmatprep.subr.bf16.mxu0 %v2794_v4 }
  0xef   :  { %v226_v45 = vpop.f32.mrb[0].mxu0 }
  0xf0   :  { %v228_v46 = vpop.f32.mrb[1].mxu0  ;;  %v231_v50 = vadd.f32 %v226_v45, %v2909_v49 }
  0xf1   :  { %v232_v47 = vadd.f32 %v228_v46, %v2905_v44 }
  0xf2   :  { %v2109_v51 = vmul.f32 -1.442695, %v231_v50 }
  0xf3   :  { %240 = vrot.lane.b32.xlu0 %v232_v47, %s2741_s30 }
  0xf4   :  { %2692 = vpow2.f32 %v2109_v51 }
  0xfe   :  { %v2693_v52 = vpop.eup %2692 }
  0xff   :  { %v236_v53 = vadd.f32 1.0, %v2693_v52 }
 0x101   :  { %2694 = vrcp.f32 %v236_v53 }
 0x10b   :  { %v2695_v54 = vpop.eup %2694 }
 0x165   :  { %v241_v55 = vpop.permute.xlu0 %240 }
 0x166   :  { %v243_v56 = vmul.f32 %v2695_v54, %v241_v55  ;;  %v2118_v55 = vld [vmem:[%s3270_s0 + $0x4] sm:$0x3] }
 0x168   :  { %v244_v57 = vadd.f32 %v243_v56, %v232_v47 }
 0x16a   :  { %2696 = vtanh.f32 %v244_v57 }
 0x174   :  { %v2697_v5 = vpop.eup %2696 }
 0x175   :  { %v246_v7 = vsub.f32 0.0, %v2697_v5 }
 0x177   :  { %248 = vrot.lane.b32.xlu0 %v246_v7, %s2741_s30 }
 0x1e9   :  { %v249_v13 = vpop.permute.xlu0 %248 }
 0x1ea   :  { %v251_v16 = vmul.f32 %v2695_v54, %v249_v13 }
 0x1ec   :  { %253 = vrot.lane.b32.xlu1 %v251_v16, %s2741_s30 }
 0x25e   :  { %v254_v17 = vpop.permute.xlu1 %253 }
 0x25f   :  { %v256_v18 = vadd.f32 %v2697_v5, %v254_v17 }
 0x261   :  { %2249 = vmatmul.mubr.msk.f32.vlgmr.msra.gmra.mrb[0].mxu1 %vm81_vm2, %v256_v18 }
 0x262   :  { %2423 = vmatpush1.bf16.msra.mxu1 %v2805_v8  ;;  %403 = vmatprep.mubr.f32.mxu1 %v2740_v3 }
 0x263   :  { %2425 = vmatprep.subr.bf16.mxu1 %v2807_v9 }
 0x266   :  { %2427 = vmatpush1.bf16.msra.mxu1 %v2823_v14 }
 0x267   :  { %2429 = vmatprep.subr.bf16.mxu1 %v2826_v15 }
 0x26a   :  { %2431 = vmatpush1.bf16.msra.mxu1 %v2841_v20 }
 0x26b   :  { %2433 = vmatprep.subr.bf16.mxu1 %v2844_v21 }
 0x26e   :  { %2435 = vmatpush1.bf16.msra.mxu1 %v2859_v26 }
 0x26f   :  { %2437 = vmatprep.subr.bf16.mxu1 %v2862_v27 }
 0x271   :  { %2113 = vmatmul.mubr.msk.f32.vlgmr.msra.gmra.mrb[2].mxu1 %vm81_vm2, %v256_v18 }
 0x272   :  { %2439 = vmatpush1.bf16.msra.mxu1 %v2877_v32  ;;  %477 = vmatprep.mubr.f32.mxu1 %v2740_v3 }
 0x273   :  { %2441 = vmatprep.subr.bf16.mxu1 %v2880_v33 }
 0x276   :  { %2443 = vmatpush1.bf16.msra.mxu1 %v2890_v36 }
 0x277   :  { %2480 = vmatprep.subr.bf16.mxu1 %v2742_v58 }
 0x334   :  { %v326_v22 = vpop.f32.mrb[0].mxu1 }
 0x335   :  { %v327_v24 = vadd.f32 %v2987_v19, %v326_v22  ;;  %v2250_v25 = vpop.f32.mrb[1].mxu1 }
 0x337   :  { %331 = vst.msk [vmem:[%s3275_s7] sm:$0x3] %vm330_vm3, %v327_v24  ;;  %v336_v29 = vsub.f32 %v2111_v23, %v327_v24 }
 0x339   :  { %v337_v30 = vmul.f32 %v2112_v28, %v336_v29 }
 0x33b   :  { %v338_v31 = vadd.f32 %v337_v30, %v327_v24 }
 0x33d   :  { %2114 = vmatmul.mubr.msk.f32.vlgmr.msra.gmra.mrb[2].mxu1 %vm156_vm0, %v338_v31 }
 0x33e   :  { %2482 = vmatpush3.bf16.msra.mxu1 %v2923_v62  ;;  %2286 = vmatprep.mubr.msk.f32.mxu1 %vm2743_vm1, %v2740_v3 }
 0x33f   :  { %2483 = vmatprep.subr.bf16.mxu1 %v2742_v58 }
 0x342   :  { %2485 = vmatpush3.bf16.msra.mxu1 %v2929_v0 }
 0x343   :  { %2486 = vmatprep.subr.bf16.mxu1 %v2742_v58 }
 0x346   :  { %2488 = vmatpush3.bf16.msra.mxu1 %v2941_v6 }
 0x347   :  { %2489 = vmatprep.subr.bf16.mxu1 %v2742_v58 }
 0x34a   :  { %2491 = vmatpush3.bf16.msra.mxu1 %v2954_v12 }
 0x34b   :  { %2493 = vmatprep.subr.bf16.mxu1 %v2794_v4 }
 0x410   :  { %v479_v34 = vpop.f32.mrb[2].mxu1 }
 0x411   :  { %v481_v35 = vpop.f32.mrb[3].mxu1  ;;  %v484_v38 = vadd.f32 %v479_v34, %v2909_v49  ;;  %v2125_v34 = vld [vmem:[%s3270_s0 + $0x6] sm:$0x3] }
 0x412   :  { %v485_v37 = vadd.f32 %v481_v35, %v2905_v44 }
 0x413   :  { %v2115_v39 = vmul.f32 -1.442695, %v484_v38  ;;  %v2126_v38 = vld [vmem:[%s3271_s1 + $0x6] sm:$0x3] }
 0x414   :  { %493 = vrot.lane.b32.xlu1 %v485_v37, %s2741_s30 }
 0x415   :  { %2698 = vpow2.f32 %v2115_v39 }
 0x41f   :  { %v2699_v40 = vpop.eup %2698 }
 0x420   :  { %v489_v41 = vadd.f32 1.0, %v2699_v40 }
 0x422   :  { %2700 = vrcp.f32 %v489_v41 }
 0x42c   :  { %v2701_v42 = vpop.eup %2700 }
 0x486   :  { %v494_v43 = vpop.permute.xlu1 %493 }
 0x487   :  { %v496_v45 = vmul.f32 %v2701_v42, %v494_v43 }
 0x489   :  { %v497_v46 = vadd.f32 %v496_v45, %v485_v37 }
 0x48b   :  { %2702 = vtanh.f32 %v497_v46 }
 0x495   :  { %v2703_v47 = vpop.eup %2702 }
 0x496   :  { %v499_v48 = vsub.f32 %v256_v18, %v2703_v47 }
 0x498   :  { %501 = vrot.lane.b32.xlu0 %v499_v48, %s2741_s30 }
 0x50a   :  { %v502_v50 = vpop.permute.xlu0 %501 }
 0x50b   :  { %v504_v51 = vmul.f32 %v2701_v42, %v502_v50 }
 0x50d   :  { %506 = vrot.lane.b32.xlu1 %v504_v51, %s2741_s30 }
 0x57f   :  { %v507_v52 = vpop.permute.xlu1 %506 }
 0x580   :  { %v509_v53 = vadd.f32 %v2703_v47, %v507_v52 }
 0x582   :  { %2268 = vmatmul.mubr.msk.f32.vlgmr.msra.gmra.mrb[2].mxu0 %vm81_vm2, %v509_v53 }
 0x583   :  { %2459 = vmatpush1.bf16.msra.mxu0 %v2805_v8  ;;  %656 = vmatprep.mubr.f32.mxu0 %v2740_v3 }
 0x584   :  { %2461 = vmatprep.subr.bf16.mxu0 %v2807_v9 }
 0x587   :  { %2463 = vmatpush1.bf16.msra.mxu0 %v2823_v14 }
 0x588   :  { %2465 = vmatprep.subr.bf16.mxu0 %v2826_v15 }
 0x58b   :  { %2467 = vmatpush1.bf16.msra.mxu0 %v2841_v20 }
 0x58c   :  { %2469 = vmatprep.subr.bf16.mxu0 %v2844_v21 }
 0x58f   :  { %2471 = vmatpush1.bf16.msra.mxu0 %v2859_v26 }
 0x590   :  { %2473 = vmatprep.subr.bf16.mxu0 %v2862_v27 }
 0x592   :  { %2120 = vmatmul.mubr.msk.f32.vlgmr.msra.gmra.mrb[4].mxu0 %vm81_vm2, %v509_v53 }
 0x593   :  { %2475 = vmatpush1.bf16.msra.mxu0 %v2877_v32  ;;  %730 = vmatprep.mubr.f32.mxu0 %v2740_v3 }
 0x594   :  { %2477 = vmatprep.subr.bf16.mxu0 %v2880_v33 }
 0x597   :  { %2479 = vmatpush1.bf16.msra.mxu0 %v2890_v36 }
 0x598   :  { %2516 = vmatprep.subr.bf16.mxu0 %v2742_v58 }
 0x655   :  { %v579_v54 = vpop.f32.mrb[2].mxu0 }
 0x656   :  { %v580_v56 = vadd.f32 %v2987_v19, %v579_v54  ;;  %v2269_v57 = vpop.f32.mrb[3].mxu0 }
 0x658   :  { %2117 = vst.msk [vmem:[%s3275_s7 + $0x2] sm:$0x3] %vm330_vm3, %v580_v56  ;;  %v589_v60 = vsub.f32 %v2118_v55, %v580_v56 }
 0x65a   :  { %v590_v61 = vmul.f32 %v2119_v59, %v589_v60 }
 0x65c   :  { %v591_v63 = vadd.f32 %v590_v61, %v580_v56 }
 0x65e   :  { %2121 = vmatmul.mubr.msk.f32.vlgmr.msra.gmra.mrb[4].mxu0 %vm156_vm0, %v591_v63 }
 0x65f   :  { %2518 = vmatpush3.bf16.msra.mxu0 %v2923_v62  ;;  %2305 = vmatprep.mubr.msk.f32.mxu0 %vm2743_vm1, %v2740_v3 }
 0x660   :  { %2519 = vmatprep.subr.bf16.mxu0 %v2742_v58 }
 0x663   :  { %2521 = vmatpush3.bf16.msra.mxu0 %v2929_v0 }
 0x664   :  { %2522 = vmatprep.subr.bf16.mxu0 %v2742_v58 }
 0x667   :  { %2524 = vmatpush3.bf16.msra.mxu0 %v2941_v6 }
 0x668   :  { %2525 = vmatprep.subr.bf16.mxu0 %v2742_v58 }
 0x66b   :  { %2527 = vmatpush3.bf16.msra.mxu0 %v2954_v12 }
 0x66c   :  { %2529 = vmatprep.subr.bf16.mxu0 %v2794_v4 }
 0x731   :  { %v732_v1 = vpop.f32.mrb[4].mxu0 }
 0x732   :  { %v734_v2 = vpop.f32.mrb[5].mxu0  ;;  %v737_v7 = vadd.f32 %v732_v1, %v2909_v49  ;;  %v2132_v1 = vld [vmem:[%s3270_s0 + $0x8] sm:$0x3] }
 0x733   :  { %v738_v5 = vadd.f32 %v734_v2, %v2905_v44 }
 0x734   :  { %v2122_v10 = vmul.f32 -1.442695, %v737_v7  ;;  %v2133_v7 = vld [vmem:[%s3271_s1 + $0x8] sm:$0x3] }
 0x735   :  { %746 = vrot.lane.b32.xlu0 %v738_v5, %s2741_s30 }
 0x736   :  { %2704 = vpow2.f32 %v2122_v10 }
 0x740   :  { %v2705_v11 = vpop.eup %2704 }
 0x741   :  { %v742_v13 = vadd.f32 1.0, %v2705_v11 }
 0x743   :  { %2706 = vrcp.f32 %v742_v13 }
 0x74d   :  { %v2707_v16 = vpop.eup %2706 }
 0x7a7   :  { %v747_v17 = vpop.permute.xlu0 %746 }
 0x7a8   :  { %v749_v18 = vmul.f32 %v2707_v16, %v747_v17 }
 0x7aa   :  { %v750_v22 = vadd.f32 %v749_v18, %v738_v5 }
 0x7ac   :  { %2708 = vtanh.f32 %v750_v22 }
 0x7b6   :  { %v2709_v23 = vpop.eup %2708 }
 0x7b7   :  { %v752_v24 = vsub.f32 %v509_v53, %v2709_v23 }
 0x7b9   :  { %754 = vrot.lane.b32.xlu1 %v752_v24, %s2741_s30 }
 0x82b   :  { %v755_v25 = vpop.permute.xlu1 %754 }
 0x82c   :  { %v757_v28 = vmul.f32 %v2707_v16, %v755_v25 }
 0x82e   :  { %759 = vrot.lane.b32.xlu0 %v757_v28, %s2741_s30 }
 0x8a0   :  { %v760_v29 = vpop.permute.xlu0 %759 }
 0x8a1   :  { %v762_v30 = vadd.f32 %v2709_v23, %v760_v29 }
 0x8a3   :  { %2287 = vmatmul.mubr.msk.f32.vlgmr.msra.gmra.mrb[4].mxu1 %vm81_vm2, %v762_v30 }
 0x8a4   :  { %2495 = vmatpush1.bf16.msra.mxu1 %v2805_v8  ;;  %909 = vmatprep.mubr.f32.mxu1 %v2740_v3 }
 0x8a5   :  { %2497 = vmatprep.subr.bf16.mxu1 %v2807_v9 }
 0x8a8   :  { %2499 = vmatpush1.bf16.msra.mxu1 %v2823_v14 }
 0x8a9   :  { %2501 = vmatprep.subr.bf16.mxu1 %v2826_v15 }
 0x8ac   :  { %2503 = vmatpush1.bf16.msra.mxu1 %v2841_v20 }
 0x8ad   :  { %2505 = vmatprep.subr.bf16.mxu1 %v2844_v21 }
 0x8b0   :  { %2507 = vmatpush1.bf16.msra.mxu1 %v2859_v26 }
 0x8b1   :  { %2509 = vmatprep.subr.bf16.mxu1 %v2862_v27 }
 0x8b3   :  { %2127 = vmatmul.mubr.msk.f32.vlgmr.msra.gmra.mrb[6].mxu1 %vm81_vm2, %v762_v30 }
 0x8b4   :  { %2511 = vmatpush1.bf16.msra.mxu1 %v2877_v32  ;;  %983 = vmatprep.mubr.f32.mxu1 %v2740_v3 }
 0x8b5   :  { %2513 = vmatprep.subr.bf16.mxu1 %v2880_v33 }
 0x8b8   :  { %2515 = vmatpush1.bf16.msra.mxu1 %v2890_v36 }
 0x8b9   :  { %2552 = vmatprep.subr.bf16.mxu1 %v2742_v58 }
 0x976   :  { %v832_v31 = vpop.f32.mrb[4].mxu1 }
 0x977   :  { %v833_v35 = vadd.f32 %v2987_v19, %v832_v31  ;;  %v2288_v37 = vpop.f32.mrb[5].mxu1 }
 0x979   :  { %2124 = vst.msk [vmem:[%s3275_s7 + $0x4] sm:$0x3] %vm330_vm3, %v833_v35  ;;  %v842_v39 = vsub.f32 %v2125_v34, %v833_v35 }
 0x97b   :  { %v843_v40 = vmul.f32 %v2126_v38, %v842_v39 }
 0x97d   :  { %v844_v41 = vadd.f32 %v843_v40, %v833_v35 }
 0x97f   :  { %2128 = vmatmul.mubr.msk.f32.vlgmr.msra.gmra.mrb[6].mxu1 %vm156_vm0, %v844_v41 }
 0x980   :  { %2554 = vmatpush3.bf16.msra.mxu1 %v2923_v62  ;;  %2324 = vmatprep.mubr.msk.f32.mxu1 %vm2743_vm1, %v2740_v3 }
 0x981   :  { %2555 = vmatprep.subr.bf16.mxu1 %v2742_v58 }
 0x984   :  { %2557 = vmatpush3.bf16.msra.mxu1 %v2929_v0 }
 0x985   :  { %2558 = vmatprep.subr.bf16.mxu1 %v2742_v58 }
 0x988   :  { %2560 = vmatpush3.bf16.msra.mxu1 %v2941_v6 }
 0x989   :  { %2561 = vmatprep.subr.bf16.mxu1 %v2742_v58 }
 0x98c   :  { %2563 = vmatpush3.bf16.msra.mxu1 %v2954_v12 }
 0x98d   :  { %2565 = vmatprep.subr.bf16.mxu1 %v2794_v4 }
 0xa52   :  { %v985_v42 = vpop.f32.mrb[6].mxu1 }
 0xa53   :  { %v987_v43 = vpop.f32.mrb[7].mxu1  ;;  %v990_v46 = vadd.f32 %v985_v42, %v2909_v49  ;;  %v2139_v42 = vld [vmem:[%s3270_s0 + $0xa] sm:$0x3] }
 0xa54   :  { %v991_v45 = vadd.f32 %v987_v43, %v2905_v44 }
 0xa55   :  { %v2129_v47 = vmul.f32 -1.442695, %v990_v46  ;;  %v2140_v46 = vld [vmem:[%s3271_s1 + $0xa] sm:$0x3] }
 0xa56   :  { %999 = vrot.lane.b32.xlu1 %v991_v45, %s2741_s30 }
 0xa57   :  { %2710 = vpow2.f32 %v2129_v47 }
 0xa61   :  { %v2711_v48 = vpop.eup %2710 }
 0xa62   :  { %v995_v50 = vadd.f32 1.0, %v2711_v48 }
 0xa64   :  { %2712 = vrcp.f32 %v995_v50 }
 0xa6e   :  { %v2713_v51 = vpop.eup %2712 }
 0xac8   :  { %v1000_v52 = vpop.permute.xlu1 %999 }
 0xac9   :  { %v1002_v53 = vmul.f32 %v2713_v51, %v1000_v52 }
 0xacb   :  { %v1003_v54 = vadd.f32 %v1002_v53, %v991_v45 }
 0xacd   :  { %2714 = vtanh.f32 %v1003_v54 }
 0xad7   :  { %v2715_v55 = vpop.eup %2714 }
 0xad8   :  { %v1005_v56 = vsub.f32 %v762_v30, %v2715_v55 }
 0xada   :  { %1007 = vrot.lane.b32.xlu0 %v1005_v56, %s2741_s30 }
 0xb4c   :  { %v1008_v57 = vpop.permute.xlu0 %1007 }
 0xb4d   :  { %v1010_v59 = vmul.f32 %v2713_v51, %v1008_v57 }
 0xb4f   :  { %1012 = vrot.lane.b32.xlu1 %v1010_v59, %s2741_s30 }
 0xbc1   :  { %v1013_v60 = vpop.permute.xlu1 %1012 }
 0xbc2   :  { %v1015_v61 = vadd.f32 %v2715_v55, %v1013_v60 }
 0xbc4   :  { %2306 = vmatmul.mubr.msk.f32.vlgmr.msra.gmra.mrb[6].mxu0 %vm81_vm2, %v1015_v61 }
 0xbc5   :  { %2531 = vmatpush1.bf16.msra.mxu0 %v2805_v8  ;;  %1162 = vmatprep.mubr.f32.mxu0 %v2740_v3 }
 0xbc6   :  { %2533 = vmatprep.subr.bf16.mxu0 %v2807_v9 }
 0xbc9   :  { %2535 = vmatpush1.bf16.msra.mxu0 %v2823_v14 }
 0xbca   :  { %2537 = vmatprep.subr.bf16.mxu0 %v2826_v15 }
 0xbcd   :  { %2539 = vmatpush1.bf16.msra.mxu0 %v2841_v20 }
 0xbce   :  { %2541 = vmatprep.subr.bf16.mxu0 %v2844_v21 }
 0xbd1   :  { %2543 = vmatpush1.bf16.msra.mxu0 %v2859_v26 }
 0xbd2   :  { %2545 = vmatprep.subr.bf16.mxu0 %v2862_v27 }
 0xbd4   :  { %2134 = vmatmul.mubr.msk.f32.vlgmr.msra.gmra.mrb[8].mxu0 %vm81_vm2, %v1015_v61 }
 0xbd5   :  { %2547 = vmatpush1.bf16.msra.mxu0 %v2877_v32  ;;  %1236 = vmatprep.mubr.f32.mxu0 %v2740_v3 }
 0xbd6   :  { %2549 = vmatprep.subr.bf16.mxu0 %v2880_v33 }
 0xbd9   :  { %2551 = vmatpush1.bf16.msra.mxu0 %v2890_v36 }
 0xbda   :  { %2588 = vmatprep.subr.bf16.mxu0 %v2742_v58 }
 0xc97   :  { %v1085_v63 = vpop.f32.mrb[6].mxu0 }
 0xc98   :  { %v1086_v2 = vadd.f32 %v2987_v19, %v1085_v63  ;;  %v2307_v5 = vpop.f32.mrb[7].mxu0 }
 0xc9a   :  { %2131 = vst.msk [vmem:[%s3275_s7 + $0x6] sm:$0x3] %vm330_vm3, %v1086_v2  ;;  %v1095_v10 = vsub.f32 %v2132_v1, %v1086_v2 }
 0xc9c   :  { %v1096_v11 = vmul.f32 %v2133_v7, %v1095_v10 }
 0xc9e   :  { %v1097_v13 = vadd.f32 %v1096_v11, %v1086_v2 }
 0xca0   :  { %2135 = vmatmul.mubr.msk.f32.vlgmr.msra.gmra.mrb[8].mxu0 %vm156_vm0, %v1097_v13  ;;  %v2146_v13 = vld [vmem:[%s3270_s0 + $0xc] sm:$0x3] }
 0xca1   :  { %2590 = vmatpush3.bf16.msra.mxu0 %v2923_v62  ;;  %2343 = vmatprep.mubr.msk.f32.mxu0 %vm2743_vm1, %v2740_v3 }
 0xca2   :  { %2591 = vmatprep.subr.bf16.mxu0 %v2742_v58 }
 0xca5   :  { %2593 = vmatpush3.bf16.msra.mxu0 %v2929_v0 }
 0xca6   :  { %2594 = vmatprep.subr.bf16.mxu0 %v2742_v58 }
 0xca9   :  { %2596 = vmatpush3.bf16.msra.mxu0 %v2941_v6 }
 0xcaa   :  { %2597 = vmatprep.subr.bf16.mxu0 %v2742_v58 }
 0xcad   :  { %2599 = vmatpush3.bf16.msra.mxu0 %v2954_v12 }
 0xcae   :  { %2601 = vmatprep.subr.bf16.mxu0 %v2794_v4 }
 0xd73   :  { %v1238_v16 = vpop.f32.mrb[8].mxu0 }
 0xd74   :  { %v1240_v17 = vpop.f32.mrb[9].mxu0  ;;  %v1243_v22 = vadd.f32 %v1238_v16, %v2909_v49 }
 0xd75   :  { %v1244_v18 = vadd.f32 %v1240_v17, %v2905_v44 }
 0xd76   :  { %v2136_v23 = vmul.f32 -1.442695, %v1243_v22 }
 0xd77   :  { %1252 = vrot.lane.b32.xlu0 %v1244_v18, %s2741_s30 }
 0xd78   :  { %2716 = vpow2.f32 %v2136_v23 }
 0xd82   :  { %v2717_v24 = vpop.eup %2716 }
 0xd83   :  { %v1248_v25 = vadd.f32 1.0, %v2717_v24 }
 0xd85   :  { %2718 = vrcp.f32 %v1248_v25 }
 0xd8f   :  { %v2719_v28 = vpop.eup %2718 }
 0xde9   :  { %v1253_v29 = vpop.permute.xlu0 %1252 }
 0xdea   :  { %v1255_v30 = vmul.f32 %v2719_v28, %v1253_v29 }
 0xdec   :  { %v1256_v31 = vadd.f32 %v1255_v30, %v1244_v18  ;;  %v2147_v18 = vld [vmem:[%s3271_s1 + $0xc] sm:$0x3] }
 0xdee   :  { %2720 = vtanh.f32 %v1256_v31 }
 0xdf8   :  { %v2721_v34 = vpop.eup %2720 }
 0xdf9   :  { %v1258_v35 = vsub.f32 %v1015_v61, %v2721_v34 }
 0xdfb   :  { %1260 = vrot.lane.b32.xlu1 %v1258_v35, %s2741_s30 }
 0xe6d   :  { %v1261_v37 = vpop.permute.xlu1 %1260 }
 0xe6e   :  { %v1263_v38 = vmul.f32 %v2719_v28, %v1261_v37 }
 0xe70   :  { %1265 = vrot.lane.b32.xlu0 %v1263_v38, %s2741_s30 }
 0xee2   :  { %v1266_v39 = vpop.permute.xlu0 %1265 }
 0xee3   :  { %v1268_v40 = vadd.f32 %v2721_v34, %v1266_v39 }
 0xee5   :  { %2325 = vmatmul.mubr.msk.f32.vlgmr.msra.gmra.mrb[8].mxu1 %vm81_vm2, %v1268_v40 }
 0xee6   :  { %2567 = vmatpush1.bf16.msra.mxu1 %v2805_v8  ;;  %1415 = vmatprep.mubr.f32.mxu1 %v2740_v3 }
 0xee7   :  { %2569 = vmatprep.subr.bf16.mxu1 %v2807_v9 }
 0xeea   :  { %2571 = vmatpush1.bf16.msra.mxu1 %v2823_v14 }
 0xeeb   :  { %2573 = vmatprep.subr.bf16.mxu1 %v2826_v15 }
 0xeee   :  { %2575 = vmatpush1.bf16.msra.mxu1 %v2841_v20 }
 0xeef   :  { %2577 = vmatprep.subr.bf16.mxu1 %v2844_v21 }
 0xef2   :  { %2579 = vmatpush1.bf16.msra.mxu1 %v2859_v26 }
 0xef3   :  { %2581 = vmatprep.subr.bf16.mxu1 %v2862_v27 }
 0xef5   :  { %2141 = vmatmul.mubr.msk.f32.vlgmr.msra.gmra.mrb[10].mxu1 %vm81_vm2, %v1268_v40 }
 0xef6   :  { %2583 = vmatpush1.bf16.msra.mxu1 %v2877_v32  ;;  %1489 = vmatprep.mubr.f32.mxu1 %v2740_v3 }
 0xef7   :  { %2585 = vmatprep.subr.bf16.mxu1 %v2880_v33 }
 0xefa   :  { %2587 = vmatpush1.bf16.msra.mxu1 %v2890_v36 }
 0xefb   :  { %2624 = vmatprep.subr.bf16.mxu1 %v2742_v58 }
 0xfb8   :  { %v1338_v41 = vpop.f32.mrb[8].mxu1 }
 0xfb9   :  { %v1339_v43 = vadd.f32 %v2987_v19, %v1338_v41  ;;  %v2326_v45 = vpop.f32.mrb[9].mxu1 }
 0xfbb   :  { %2138 = vst.msk [vmem:[%s3275_s7 + $0x8] sm:$0x3] %vm330_vm3, %v1339_v43  ;;  %v1348_v47 = vsub.f32 %v2139_v42, %v1339_v43 }
 0xfbd   :  { %v1349_v48 = vmul.f32 %v2140_v46, %v1348_v47 }
 0xfbf   :  { %v1350_v50 = vadd.f32 %v1349_v48, %v1339_v43 }
 0xfc1   :  { %2142 = vmatmul.mubr.msk.f32.vlgmr.msra.gmra.mrb[10].mxu1 %vm156_vm0, %v1350_v50 }
 0xfc2   :  { %2626 = vmatpush3.bf16.msra.mxu1 %v2923_v62  ;;  %2362 = vmatprep.mubr.msk.f32.mxu1 %vm2743_vm1, %v2740_v3 }
 0xfc3   :  { %2627 = vmatprep.subr.bf16.mxu1 %v2742_v58 }
 0xfc6   :  { %2629 = vmatpush3.bf16.msra.mxu1 %v2929_v0 }
 0xfc7   :  { %2630 = vmatprep.subr.bf16.mxu1 %v2742_v58 }
 0xfca   :  { %2632 = vmatpush3.bf16.msra.mxu1 %v2941_v6 }
 0xfcb   :  { %2633 = vmatprep.subr.bf16.mxu1 %v2742_v58 }
 0xfce   :  { %2635 = vmatpush3.bf16.msra.mxu1 %v2954_v12 }
 0xfcf   :  { %2637 = vmatprep.subr.bf16.mxu1 %v2794_v4 }
0x1094   :  { %v1491_v51 = vpop.f32.mrb[10].mxu1 }
0x1095   :  { %v1493_v52 = vpop.f32.mrb[11].mxu1  ;;  %v1496_v54 = vadd.f32 %v1491_v51, %v2909_v49 }
0x1096   :  { %v1497_v53 = vadd.f32 %v1493_v52, %v2905_v44 }
0x1097   :  { %v2143_v55 = vmul.f32 -1.442695, %v1496_v54 }
0x1098   :  { %1505 = vrot.lane.b32.xlu1 %v1497_v53, %s2741_s30 }
0x1099   :  { %2722 = vpow2.f32 %v2143_v55 }
0x10a3   :  { %v2723_v56 = vpop.eup %2722 }
0x10a4   :  { %v1501_v57 = vadd.f32 1.0, %v2723_v56 }
0x10a6   :  { %2724 = vrcp.f32 %v1501_v57 }
0x10b0   :  { %v2725_v59 = vpop.eup %2724 }
0x110a   :  { %v1506_v60 = vpop.permute.xlu1 %1505 }
0x110b   :  { %v1508_v61 = vmul.f32 %v2725_v59, %v1506_v60 }
0x110d   :  { %v1509_v63 = vadd.f32 %v1508_v61, %v1497_v53 }
0x110f   :  { %2726 = vtanh.f32 %v1509_v63 }
0x1119   :  { %v2727_v1 = vpop.eup %2726 }
0x111a   :  { %v1511_v4 = vsub.f32 %v1268_v40, %v2727_v1 }
0x111c   :  { %1513 = vrot.lane.b32.xlu0 %v1511_v4, %s2741_s30 }
0x118e   :  { %v1514_v2 = vpop.permute.xlu0 %1513 }
0x118f   :  { %v1516_v5 = vmul.f32 %v2725_v59, %v1514_v2 }
0x1191   :  { %1518 = vrot.lane.b32.xlu1 %v1516_v5, %s2741_s30 }
0x1203   :  { %v1519_v7 = vpop.permute.xlu1 %1518 }
0x1204   :  { %v1521_v10 = vadd.f32 %v2727_v1, %v1519_v7 }
0x1206   :  { %2344 = vmatmul.mubr.msk.f32.vlgmr.msra.gmra.mrb[10].mxu0 %vm81_vm2, %v1521_v10 }
0x1207   :  { %2603 = vmatpush1.bf16.msra.mxu0 %v2805_v8  ;;  %1668 = vmatprep.mubr.f32.mxu0 %v2740_v3 }
0x1208   :  { %2605 = vmatprep.subr.bf16.mxu0 %v2807_v9 }
0x120b   :  { %2607 = vmatpush1.bf16.msra.mxu0 %v2823_v14 }
0x120c   :  { %2609 = vmatprep.subr.bf16.mxu0 %v2826_v15 }
0x120f   :  { %2611 = vmatpush1.bf16.msra.mxu0 %v2841_v20 }
0x1210   :  { %2613 = vmatprep.subr.bf16.mxu0 %v2844_v21 }
0x1213   :  { %2615 = vmatpush1.bf16.msra.mxu0 %v2859_v26 }
0x1214   :  { %2617 = vmatprep.subr.bf16.mxu0 %v2862_v27 }
0x1216   :  { %2148 = vmatmul.mubr.msk.f32.vlgmr.msra.gmra.mrb[12].mxu0 %vm81_vm2, %v1521_v10 }
0x1217   :  { %2619 = vmatpush1.bf16.msra.mxu0 %v2877_v32  ;;  %1742 = vmatprep.mubr.f32.mxu0 %v2740_v3 }
0x1218   :  { %2621 = vmatprep.subr.bf16.mxu0 %v2880_v33 }
0x121b   :  { %2623 = vmatpush1.bf16.msra.mxu0 %v2890_v36 }
0x121c   :  { %2660 = vmatprep.subr.bf16.mxu0 %v2742_v58 }
0x12d9   :  { %v1591_v11 = vpop.f32.mrb[10].mxu0 }
0x12da   :  { %v1592_v16 = vadd.f32 %v2987_v19, %v1591_v11  ;;  %v2345_v17 = vpop.f32.mrb[11].mxu0 }
0x12dc   :  { %2145 = vst.msk [vmem:[%s3275_s7 + $0xa] sm:$0x3] %vm330_vm3, %v1592_v16  ;;  %v1601_v22 = vsub.f32 %v2146_v13, %v1592_v16 }
0x12de   :  { %v1602_v23 = vmul.f32 %v2147_v18, %v1601_v22 }
0x12e0   :  { %v1603_v24 = vadd.f32 %v1602_v23, %v1592_v16 }
0x12e2   :  { %2149 = vmatmul.mubr.msk.f32.vlgmr.msra.gmra.mrb[12].mxu0 %vm156_vm0, %v1603_v24 }
0x12e3   :  { %2662 = vmatpush3.bf16.msra.mxu0 %v2923_v62  ;;  %2381 = vmatprep.mubr.msk.f32.mxu0 %vm2743_vm1, %v2740_v3 }
0x12e4   :  { %2663 = vmatprep.subr.bf16.mxu0 %v2742_v58 }
0x12e7   :  { %2665 = vmatpush3.bf16.msra.mxu0 %v2929_v0 }
0x12e8   :  { %2666 = vmatprep.subr.bf16.mxu0 %v2742_v58 }
0x12eb   :  { %2668 = vmatpush3.bf16.msra.mxu0 %v2941_v6 }
0x12ec   :  { %2669 = vmatprep.subr.bf16.mxu0 %v2742_v58 }
0x12ef   :  { %2671 = vmatpush3.bf16.msra.mxu0 %v2954_v12 }
0x13b5   :  { %v1744_v25 = vpop.f32.mrb[12].mxu0 }
0x13b6   :  { %v1746_v28 = vpop.f32.mrb[13].mxu0  ;;  %v1749_v62 = vadd.f32 %v1744_v25, %v2909_v49 }
0x13b7   :  { %v1750_v29 = vadd.f32 %v1746_v28, %v2905_v44 }
0x13b8   :  { %v2150_v30 = vmul.f32 -1.442695, %v1749_v62 }
0x13b9   :  { %1758 = vrot.lane.b32.xlu0 %v1750_v29, %s2741_s30 }
0x13ba   :  { %2728 = vpow2.f32 %v2150_v30 }
0x13c4   :  { %v2729_v31 = vpop.eup %2728 }
0x13c5   :  { %v1754_v0 = vadd.f32 1.0, %v2729_v31 }
0x13c7   :  { %2730 = vrcp.f32 %v1754_v0 }
0x13d1   :  { %v2731_v34 = vpop.eup %2730 }
0x142b   :  { %v1759_v35 = vpop.permute.xlu0 %1758 }
0x142c   :  { %v1761_v6 = vmul.f32 %v2731_v34, %v1759_v35 }
0x142e   :  { %v1762_v37 = vadd.f32 %v1761_v6, %v1750_v29 }
0x1430   :  { %2732 = vtanh.f32 %v1762_v37 }
0x143a   :  { %v2733_v58 = vpop.eup %2732 }
0x143b   :  { %v1764_v12 = vsub.f32 %v1521_v10, %v2733_v58 }
0x143d   :  { %1766 = vrot.lane.b32.xlu1 %v1764_v12, %s2741_s30 }
0x14af   :  { %v1767_v38 = vpop.permute.xlu1 %1766 }
0x14b0   :  { %v1769_v39 = vmul.f32 %v2731_v34, %v1767_v38 }
0x14b2   :  { %1771 = vrot.lane.b32.xlu0 %v1769_v39, %s2741_s30 }
0x1524   :  { %v1772_v40 = vpop.permute.xlu0 %1771 }
0x1525   :  { %v1774_v41 = vadd.f32 %v2733_v58, %v1772_v40 }
0x1527   :  { %2363 = vmatmul.mubr.msk.f32.vlgmr.msra.gmra.mrb[12].mxu1 %vm81_vm2, %v1774_v41 }
0x1528   :  { %2639 = vmatpush1.bf16.msra.mxu1 %v2805_v8  ;;  %1921 = vmatprep.mubr.f32.mxu1 %v2740_v3 }
0x1529   :  { %2641 = vmatprep.subr.bf16.mxu1 %v2807_v9  ;;  %v2153_v9 = vld [vmem:[%s3270_s0 + $0xe] sm:$0x3] }
0x152c   :  { %2643 = vmatpush1.bf16.msra.mxu1 %v2823_v14 }
0x152d   :  { %2645 = vmatprep.subr.bf16.mxu1 %v2826_v15 }
0x1530   :  { %2647 = vmatpush1.bf16.msra.mxu1 %v2841_v20  ;;  %v2154_v20 = vld [vmem:[%s3271_s1 + $0xe] sm:$0x3] }
0x1531   :  { %2649 = vmatprep.subr.bf16.mxu1 %v2844_v21 }
0x1534   :  { %2651 = vmatpush1.bf16.msra.mxu1 %v2859_v26 }
0x1535   :  { %2653 = vmatprep.subr.bf16.mxu1 %v2862_v27 }
0x1537   :  { %2155 = vmatmul.mubr.msk.f32.vlgmr.msra.gmra.mrb[14].mxu1 %vm81_vm2, %v1774_v41 }
0x1538   :  { %2655 = vmatpush1.bf16.msra.mxu1 %v2877_v32  ;;  %1995 = vmatprep.mubr.f32.mxu1 %v2740_v3 }
0x1539   :  { %2657 = vmatprep.subr.bf16.mxu1 %v2880_v33 }
0x153c   :  { %2659 = vmatpush1.bf16.msra.mxu1 %v2890_v36 }
0x15fa   :  { %v1844_v8 = vpop.f32.mrb[12].mxu1 }
0x15fb   :  { %v1845_v14 = vadd.f32 %v2987_v19, %v1844_v8  ;;  %v2364_v15 = vpop.f32.mrb[13].mxu1 }
0x15fd   :  { %2152 = vst.msk [vmem:[%s3275_s7 + $0xc] sm:$0x3] %vm330_vm3, %v1845_v14  ;;  %v1854_v3 = vsub.f32 %v2153_v9, %v1845_v14 }
0x15ff   :  { %v1855_v21 = vmul.f32 %v2154_v20, %v1854_v3 }
0x1601   :  { %v1856_v26 = vadd.f32 %v1855_v21, %v1845_v14 }
0x1603   :  { %2156 = vmatmul.mubr.msk.f32.vlgmr.msra.gmra.mrb[14].mxu1 %vm156_vm0, %v1856_v26 }
0x16d6   :  { %v1997_v27 = vpop.f32.mrb[14].mxu1 }
0x16d7   :  { %v1999_v32 = vpop.f32.mrb[15].mxu1  ;;  %v2002_v36 = vadd.f32 %v1997_v27, %v2909_v49 }
0x16d8   :  { %v2003_v33 = vadd.f32 %v1999_v32, %v2905_v44 }
0x16d9   :  { %v2157_v42 = vmul.f32 -1.442695, %v2002_v36 }
0x16da   :  { %2011 = vrot.lane.b32.xlu1 %v2003_v33, %s2741_s30 }
0x16db   :  { %2734 = vpow2.f32 %v2157_v42 }
0x16e5   :  { %v2735_v43 = vpop.eup %2734 }
0x16e6   :  { %v2007_v45 = vadd.f32 1.0, %v2735_v43 }
0x16e8   :  { %2736 = vrcp.f32 %v2007_v45 }
0x16f2   :  { %v2737_v46 = vpop.eup %2736 }
0x174c   :  { %v2012_v47 = vpop.permute.xlu1 %2011 }
0x174d   :  { %v2014_v48 = vmul.f32 %v2737_v46, %v2012_v47 }
0x174f   :  { %v2015_v50 = vadd.f32 %v2014_v48, %v2003_v33 }
0x1751   :  { %2738 = vtanh.f32 %v2015_v50 }
0x175b   :  { %v2739_v51 = vpop.eup %2738 }
0x175c   :  { %v2017_v52 = vsub.f32 %v1774_v41, %v2739_v51 }
0x175e   :  { %2019 = vrot.lane.b32.xlu0 %v2017_v52, %s2741_s30 }
0x17d0   :  { %v2020_v53 = vpop.permute.xlu0 %2019 }
0x17d1   :  { %v2022_v44 = vmul.f32 %v2737_v46, %v2020_v53 }
0x17d3   :  { %2024 = vrot.lane.b32.xlu1 %v2022_v44, %s2741_s30 }
0x1845   :  { %v2025_v54 = vpop.permute.xlu1 %2024 }
0x1846   :  { %v2027_v49 = vadd.f32 %v2739_v51, %v2025_v54 }
0x1848   :  { %2382 = vmatmul.mubr.msk.f32.vlgmr.msra.gmra.mrb[14].mxu0 %vm81_vm2, %v2027_v49 }
0x191b   :  { %v2097_v55 = vpop.f32.mrb[14].mxu0 }
0x191c   :  { %v2098_v56 = vadd.f32 %v2987_v19, %v2097_v55  ;;  %v2383_v57 = vpop.f32.mrb[15].mxu0 }
0x191e   :  { %2159 = vst.msk [vmem:[%s3275_s7 + $0xe] sm:$0x3] %vm330_vm3, %v2098_v56 }

</bundles_post_ra>
